<compile_context>
chip_gen: v5e
topology: v5e:2x2
jax: 0.10.0
libtpu: 0.0.40
codegen_flags: <defaults>
</compile_context>

<pallas_src>
import math

import jax
import jax.numpy as jnp
from jax.experimental import pallas as pl
from jax.experimental.pallas import tpu as pltpu

# ---- small synthetic BERT config (bert-base shrunk for the demo) ----
VOCAB = 100
TYPE_VOCAB = 2
MAX_POS = 16
HIDDEN = 32
HEADS = 2
HEAD_DIM = HIDDEN // HEADS
INTERMEDIATE = 64
LAYERS = 2
NUM_CLASSES = 3
LN_EPS = 1e-12
CLS_PAD = 128          # lane-dense classifier output width (real logits = first 3 cols)


def _gelu(x):
    # tanh-approx GELU.
    # TODO(synk): HF BERT / nn.GELU default is erf-based; tanh approx deviates slightly.
    return 0.5 * x * (1.0 + jnp.tanh(0.7978845608028654 * (x + 0.044715 * x * x * x)))


def _layernorm(x, g, b):
    # Two independent cross-lane reductions (E[x], E[x^2]) -> shorter serial XLU chain.
    mean = jnp.mean(x, axis=-1, keepdims=True)
    mean_sq = jnp.mean(x * x, axis=-1, keepdims=True)
    var = mean_sq - mean * mean
    return (x - mean) * jax.lax.rsqrt(var + LN_EPS) * g + b


# ----------------- the fused whole-forward Pallas kernel (one sequence per grid step) -----------------

def bert_forward_kernel(
    x_emb_ref,        # [S, H]   word+pos+type embedding sum (pre-LN), this sequence
    mask_ref,         # [1, S]   additive padding mask for this sequence (0 or -1e4)
    emb_ln_g_ref, emb_ln_b_ref,            # [1, H]
    qkv_w_ref,        # [L, H, 3H]  (Q columns pre-scaled by 1/sqrt(HD))
    qkv_b_ref,        # [L, 1, 3H]
    o_w_ref,          # [L, H, H]
    o_b_ref,          # [L, 1, H]
    ln1_g_ref, ln1_b_ref,                  # [L, 1, H]
    ff1_w_ref,        # [L, H, I]
    ff1_b_ref,        # [L, 1, I]
    ff2_w_ref,        # [L, I, H]
    ff2_b_ref,        # [L, 1, H]
    ln2_g_ref, ln2_b_ref,                  # [L, 1, H]
    pooler_w_ref,     # [H, H]
    pooler_b_ref,     # [1, H]
    cls_w_ref,        # [H, CLS_PAD]  (zero-padded past NUM_CLASSES)
    cls_b_ref,        # [1, CLS_PAD]
    logits_ref,       # [S, CLS_PAD]  (only row 0 = CLS is used by the wrapper)
):
    # ---- embedding LayerNorm ----
    x = _layernorm(x_emb_ref[...], emb_ln_g_ref[...], emb_ln_b_ref[...])   # [S, H]
    mask = mask_ref[...]                                                    # [1, S]

    for l in range(LAYERS):                     # static unroll, LAYERS = 2
        # ---- self-attention: one fused QKV matmul per layer ----
        qkv = (jnp.dot(x, qkv_w_ref[l], preferred_element_type=jnp.float32)
               + qkv_b_ref[l])                                              # [S, 3H]
        o_w_l = o_w_ref[l]                                                  # [H, H]

        attn_out = o_b_ref[l]                                               # [1, H] (broadcasts)
        for h in range(HEADS):                  # static unroll, HEADS = 2
            lo, hi = h * HEAD_DIM, (h + 1) * HEAD_DIM
            q_h = qkv[:, lo:hi]
            k_h = qkv[:, HIDDEN + lo:HIDDEN + hi]
            v_h = qkv[:, 2 * HIDDEN + lo:2 * HIDDEN + hi]

            # Q already carries 1/sqrt(HD); padded key lanes get -1e4 and underflow under exp.
            s = jax.lax.dot_general(q_h, k_h, (((1,), (1,)), ((), ())),
                                    preferred_element_type=jnp.float32) + mask   # [S, S]
            p = jnp.exp(s)   # no max-subtraction: scores are small & bounded here
            p = p * pl.reciprocal(jnp.sum(p, axis=-1, keepdims=True), approx=True)
            ctx_h = jnp.dot(p, v_h, preferred_element_type=jnp.float32)          # [S, HD]
            # accumulate through this head's rows of the output projection (no lane concat)
            attn_out = attn_out + jnp.dot(ctx_h, o_w_l[lo:hi, :],
                                          preferred_element_type=jnp.float32)    # [S, H]

        x = _layernorm(attn_out + x, ln1_g_ref[l], ln1_b_ref[l])

        # ---- feed-forward ----
        h1 = _gelu(jnp.dot(x, ff1_w_ref[l], preferred_element_type=jnp.float32)
                   + ff1_b_ref[l])                                          # [S, I]
        h2 = (jnp.dot(h1, ff2_w_ref[l], preferred_element_type=jnp.float32)
              + ff2_b_ref[l])                                               # [S, H]
        x = _layernorm(h2 + x, ln2_g_ref[l], ln2_b_ref[l])

    # ---- pooler (tanh) + classifier on the full slab; dropout = identity at inference ----
    # Running all S rows costs the same single MXU pass and gives a full unmasked [S,128] store;
    # only row 0 (CLS) is consumed by the wrapper.
    pooled = jnp.tanh(
        jnp.dot(x, pooler_w_ref[...], preferred_element_type=jnp.float32)
        + pooler_b_ref[...])                                                # [S, H]
    logits_ref[...] = (
        jnp.dot(pooled, cls_w_ref[...], preferred_element_type=jnp.float32)
        + cls_b_ref[...])                                                   # [S, CLS_PAD]


# ----------------- parameter init (deterministic, synthetic) -----------------

def init_params(key):
    keys = iter(jax.random.split(key, 8 * LAYERS * 8 + 16))

    def nrm(shape):
        return jax.random.normal(next(keys), shape, jnp.float32) * 0.02

    params = {
        "word_emb": nrm((VOCAB, HIDDEN)),
        "pos_emb": nrm((MAX_POS, HIDDEN)),
        "type_emb": nrm((TYPE_VOCAB, HIDDEN)),
        "emb_ln_g": jnp.ones((HIDDEN,), jnp.float32),
        "emb_ln_b": jnp.zeros((HIDDEN,), jnp.float32),
        "layers": [],
        "pooler_w": nrm((HIDDEN, HIDDEN)),
        "pooler_b": jnp.zeros((HIDDEN,), jnp.float32),
        "cls_w": nrm((HIDDEN, NUM_CLASSES)),
        "cls_b": jnp.zeros((NUM_CLASSES,), jnp.float32),
    }
    for _ in range(LAYERS):
        params["layers"].append({
            "q_w": nrm((HIDDEN, HIDDEN)), "q_b": jnp.zeros((HIDDEN,), jnp.float32),
            "k_w": nrm((HIDDEN, HIDDEN)), "k_b": jnp.zeros((HIDDEN,), jnp.float32),
            "v_w": nrm((HIDDEN, HIDDEN)), "v_b": jnp.zeros((HIDDEN,), jnp.float32),
            "o_w": nrm((HIDDEN, HIDDEN)), "o_b": jnp.zeros((HIDDEN,), jnp.float32),
            "ln1_g": jnp.ones((HIDDEN,), jnp.float32),
            "ln1_b": jnp.zeros((HIDDEN,), jnp.float32),
            "ff1_w": nrm((HIDDEN, INTERMEDIATE)),
            "ff1_b": jnp.zeros((INTERMEDIATE,), jnp.float32),
            "ff2_w": nrm((INTERMEDIATE, HIDDEN)),
            "ff2_b": jnp.zeros((HIDDEN,), jnp.float32),
            "ln2_g": jnp.ones((HIDDEN,), jnp.float32),
            "ln2_b": jnp.zeros((HIDDEN,), jnp.float32),
        })
    return params


# ----------------- forward (matches BERTFineTuned.forward, eval mode) -----------------

def bert_fine_tuned_forward(params, input_ids, attention_mask):
    B, S = input_ids.shape

    # ---- embeddings (gather = plain-JAX glue); token_type_ids = 0 (HF default) ----
    x_emb = (params["word_emb"][input_ids]
             + params["pos_emb"][jnp.arange(S)][None, :, :]
             + params["type_emb"][0][None, None, :]).astype(jnp.float32)       # [B, S, H]

    # ---- per-sequence additive padding mask (HF convention: -1e4 on pad key positions) ----
    mask_add = ((1.0 - attention_mask.astype(jnp.float32)) * -1e4).reshape(B, 1, S)

    # ---- pack per-layer weights into stacked arrays; fold 1/sqrt(HD) into Q ----
    scale = 1.0 / math.sqrt(HEAD_DIM)
    lyrs = params["layers"]
    qkv_w = jnp.stack([jnp.concatenate([l["q_w"] * scale, l["k_w"], l["v_w"]], axis=1)
                       for l in lyrs])                                       # [L, H, 3H]
    qkv_b = jnp.stack([jnp.concatenate([l["q_b"] * scale, l["k_b"], l["v_b"]])[None, :]
                       for l in lyrs])                                       # [L, 1, 3H]
    o_w = jnp.stack([l["o_w"] for l in lyrs])                                # [L, H, H]
    o_b = jnp.stack([l["o_b"][None, :] for l in lyrs])                       # [L, 1, H]
    ln1_g = jnp.stack([l["ln1_g"][None, :] for l in lyrs])
    ln1_b = jnp.stack([l["ln1_b"][None, :] for l in lyrs])
    ff1_w = jnp.stack([l["ff1_w"] for l in lyrs])                            # [L, H, I]
    ff1_b = jnp.stack([l["ff1_b"][None, :] for l in lyrs])                   # [L, 1, I]
    ff2_w = jnp.stack([l["ff2_w"] for l in lyrs])                            # [L, I, H]
    ff2_b = jnp.stack([l["ff2_b"][None, :] for l in lyrs])                   # [L, 1, H]
    ln2_g = jnp.stack([l["ln2_g"][None, :] for l in lyrs])
    ln2_b = jnp.stack([l["ln2_b"][None, :] for l in lyrs])

    emb_ln_g = params["emb_ln_g"].reshape(1, HIDDEN)
    emb_ln_b = params["emb_ln_b"].reshape(1, HIDDEN)
    pooler_w = params["pooler_w"]
    pooler_b = params["pooler_b"].reshape(1, HIDDEN)

    # lane-dense classifier: zero-pad [H, 3] -> [H, 128]
    cls_w_pad = jnp.zeros((HIDDEN, CLS_PAD), jnp.float32).at[:, :NUM_CLASSES].set(params["cls_w"])
    cls_b_pad = jnp.zeros((1, CLS_PAD), jnp.float32).at[:, :NUM_CLASSES].set(params["cls_b"])

    # weights: same block every grid step -> stay resident in VMEM
    def resident2(shape):
        return pl.BlockSpec(shape, lambda b: (0, 0))

    def resident3(shape):
        return pl.BlockSpec(shape, lambda b: (0, 0, 0))

    in_specs = [
        pl.BlockSpec((None, S, HIDDEN), lambda b: (b, 0, 0)),      # x_emb   -> [S, H]
        pl.BlockSpec((None, 1, S), lambda b: (b, 0, 0)),           # mask    -> [1, S]
        resident2((1, HIDDEN)),                                    # emb_ln_g
        resident2((1, HIDDEN)),                                    # emb_ln_b
        resident3((LAYERS, HIDDEN, 3 * HIDDEN)),                   # qkv_w
        resident3((LAYERS, 1, 3 * HIDDEN)),                        # qkv_b
        resident3((LAYERS, HIDDEN, HIDDEN)),                       # o_w
        resident3((LAYERS, 1, HIDDEN)),                            # o_b
        resident3((LAYERS, 1, HIDDEN)),                            # ln1_g
        resident3((LAYERS, 1, HIDDEN)),                            # ln1_b
        resident3((LAYERS, HIDDEN, INTERMEDIATE)),                 # ff1_w
        resident3((LAYERS, 1, INTERMEDIATE)),                      # ff1_b
        resident3((LAYERS, INTERMEDIATE, HIDDEN)),                 # ff2_w
        resident3((LAYERS, 1, HIDDEN)),                            # ff2_b
        resident3((LAYERS, 1, HIDDEN)),                            # ln2_g
        resident3((LAYERS, 1, HIDDEN)),                            # ln2_b
        resident2((HIDDEN, HIDDEN)),                               # pooler_w
        resident2((1, HIDDEN)),                                    # pooler_b
        resident2((HIDDEN, CLS_PAD)),                              # cls_w
        resident2((1, CLS_PAD)),                                   # cls_b
    ]
    out_spec = pl.BlockSpec((None, S, CLS_PAD), lambda b: (b, 0, 0))

    logits_pad = pl.pallas_call(
        bert_forward_kernel,
        out_shape=jax.ShapeDtypeStruct((B, S, CLS_PAD), jnp.float32),
        grid=(B,),
        in_specs=in_specs,
        out_specs=out_spec,
        compiler_params=pltpu.CompilerParams(dimension_semantics=("parallel",)),
    )(x_emb, mask_add, emb_ln_g, emb_ln_b,
      qkv_w, qkv_b, o_w, o_b, ln1_g, ln1_b,
      ff1_w, ff1_b, ff2_w, ff2_b, ln2_g, ln2_b,
      pooler_w, pooler_b, cls_w_pad, cls_b_pad)

    # row 0 of each sequence = CLS token; first NUM_CLASSES lanes = real logits
    return logits_pad[:, 0, :NUM_CLASSES]


if __name__ == "__main__":
    key = jax.random.PRNGKey(0)
    pkey, ikey = jax.random.split(key)
    params = init_params(pkey)

    B, S = 2, 8
    input_ids = jax.random.randint(ikey, (B, S), 0, VOCAB, dtype=jnp.int32)
    attention_mask = jnp.array([[1, 1, 1, 1, 1, 1, 1, 1],
                                [1, 1, 1, 1, 1, 0, 0, 0]], dtype=jnp.int32)

    logits = bert_fine_tuned_forward(params, input_ids, attention_mask)
    jax.block_until_ready(logits)
    assert logits.shape == (B, NUM_CLASSES) and logits.dtype == jnp.float32
    print("KERNEL_OK")
</pallas_src>

<mosaic_0001>
module attributes {stable_mosaic.version = 11 : i64} {
  func.func @bert_forward_kernel(%arg0: i32, %arg1: memref<1x8x32xf32, #tpu.memory_space<vmem>>, %arg2: memref<1x1x8xf32, #tpu.memory_space<vmem>>, %arg3: memref<1x32xf32, #tpu.memory_space<vmem>>, %arg4: memref<1x32xf32, #tpu.memory_space<vmem>>, %arg5: memref<2x32x96xf32, #tpu.memory_space<vmem>>, %arg6: memref<2x1x96xf32, #tpu.memory_space<vmem>>, %arg7: memref<2x32x32xf32, #tpu.memory_space<vmem>>, %arg8: memref<2x1x32xf32, #tpu.memory_space<vmem>>, %arg9: memref<2x1x32xf32, #tpu.memory_space<vmem>>, %arg10: memref<2x1x32xf32, #tpu.memory_space<vmem>>, %arg11: memref<2x32x64xf32, #tpu.memory_space<vmem>>, %arg12: memref<2x1x64xf32, #tpu.memory_space<vmem>>, %arg13: memref<2x64x32xf32, #tpu.memory_space<vmem>>, %arg14: memref<2x1x32xf32, #tpu.memory_space<vmem>>, %arg15: memref<2x1x32xf32, #tpu.memory_space<vmem>>, %arg16: memref<2x1x32xf32, #tpu.memory_space<vmem>>, %arg17: memref<32x32xf32, #tpu.memory_space<vmem>>, %arg18: memref<1x32xf32, #tpu.memory_space<vmem>>, %arg19: memref<32x128xf32, #tpu.memory_space<vmem>>, %arg20: memref<1x128xf32, #tpu.memory_space<vmem>>, %arg21: memref<1x8x128xf32, #tpu.memory_space<vmem>>) attributes {dimension_semantics = [#tpu.dimension_semantics<parallel>], iteration_bounds = array<i64: 2>, scalar_prefetch = 0 : i64, scratch_operands = 0 : i64, tpu.core_type = #tpu.core_type<tc>, window_params = [{transform_indices = @transform_0, window_bounds = array<i64: 1, 8, 32>}, {transform_indices = @transform_1, window_bounds = array<i64: 1, 1, 8>}, {pipeline_mode = #tpu.pipeline_mode<synchronous>, transform_indices = @transform_2, window_bounds = array<i64: 1, 32>}, {pipeline_mode = #tpu.pipeline_mode<synchronous>, transform_indices = @transform_3, window_bounds = array<i64: 1, 32>}, {pipeline_mode = #tpu.pipeline_mode<synchronous>, transform_indices = @transform_4, window_bounds = array<i64: 2, 32, 96>}, {pipeline_mode = #tpu.pipeline_mode<synchronous>, transform_indices = @transform_5, window_bounds = array<i64: 2, 1, 96>}, {pipeline_mode = #tpu.pipeline_mode<synchronous>, transform_indices = @transform_6, window_bounds = array<i64: 2, 32, 32>}, {pipeline_mode = #tpu.pipeline_mode<synchronous>, transform_indices = @transform_7, window_bounds = array<i64: 2, 1, 32>}, {pipeline_mode = #tpu.pipeline_mode<synchronous>, transform_indices = @transform_8, window_bounds = array<i64: 2, 1, 32>}, {pipeline_mode = #tpu.pipeline_mode<synchronous>, transform_indices = @transform_9, window_bounds = array<i64: 2, 1, 32>}, {pipeline_mode = #tpu.pipeline_mode<synchronous>, transform_indices = @transform_10, window_bounds = array<i64: 2, 32, 64>}, {pipeline_mode = #tpu.pipeline_mode<synchronous>, transform_indices = @transform_11, window_bounds = array<i64: 2, 1, 64>}, {pipeline_mode = #tpu.pipeline_mode<synchronous>, transform_indices = @transform_12, window_bounds = array<i64: 2, 64, 32>}, {pipeline_mode = #tpu.pipeline_mode<synchronous>, transform_indices = @transform_13, window_bounds = array<i64: 2, 1, 32>}, {pipeline_mode = #tpu.pipeline_mode<synchronous>, transform_indices = @transform_14, window_bounds = array<i64: 2, 1, 32>}, {pipeline_mode = #tpu.pipeline_mode<synchronous>, transform_indices = @transform_15, window_bounds = array<i64: 2, 1, 32>}, {pipeline_mode = #tpu.pipeline_mode<synchronous>, transform_indices = @transform_16, window_bounds = array<i64: 32, 32>}, {pipeline_mode = #tpu.pipeline_mode<synchronous>, transform_indices = @transform_17, window_bounds = array<i64: 1, 32>}, {pipeline_mode = #tpu.pipeline_mode<synchronous>, transform_indices = @transform_18, window_bounds = array<i64: 32, 128>}, {pipeline_mode = #tpu.pipeline_mode<synchronous>, transform_indices = @transform_19, window_bounds = array<i64: 1, 128>}, {transform_indices = @transform_20, window_bounds = array<i64: 1, 8, 128>}]} {
    %c0 = arith.constant 0 : index
    %c0_0 = arith.constant 0 : index
    %c0_1 = arith.constant 0 : index
    %0 = vector.load %arg1[%c0, %c0_0, %c0_1] : memref<1x8x32xf32, #tpu.memory_space<vmem>>, vector<1x8x32xf32>
    %1 = vector.shape_cast %0 : vector<1x8x32xf32> to vector<8x32xf32>
    %c0_2 = arith.constant 0 : index
    %c0_3 = arith.constant 0 : index
    %2 = vector.load %arg3[%c0_2, %c0_3] : memref<1x32xf32, #tpu.memory_space<vmem>>, vector<1x32xf32>
    %c0_4 = arith.constant 0 : index
    %c0_5 = arith.constant 0 : index
    %3 = vector.load %arg4[%c0_4, %c0_5] : memref<1x32xf32, #tpu.memory_space<vmem>>, vector<1x32xf32>
    %cst = arith.constant dense<0.000000e+00> : vector<8xf32>
    %4 = vector.multi_reduction <add>, %1, %cst [1] : vector<8x32xf32> to vector<8xf32>
    %5 = vector.shape_cast %4 : vector<8xf32> to vector<8x1xf32>
    %cst_6 = arith.constant 3.200000e+01 : f32
    %6 = vector.broadcast %cst_6 : f32 to vector<8x1xf32>
    %7 = arith.divf %5, %6 : vector<8x1xf32>
    %8 = arith.mulf %1, %1 : vector<8x32xf32>
    %cst_7 = arith.constant dense<0.000000e+00> : vector<8xf32>
    %9 = vector.multi_reduction <add>, %8, %cst_7 [1] : vector<8x32xf32> to vector<8xf32>
    %10 = vector.shape_cast %9 : vector<8xf32> to vector<8x1xf32>
    %cst_8 = arith.constant 3.200000e+01 : f32
    %11 = vector.broadcast %cst_8 : f32 to vector<8x1xf32>
    %12 = arith.divf %10, %11 : vector<8x1xf32>
    %13 = arith.mulf %7, %7 : vector<8x1xf32>
    %14 = arith.subf %12, %13 : vector<8x1xf32>
    %15 = vector.broadcast %7 : vector<8x1xf32> to vector<8x32xf32>
    %16 = arith.subf %1, %15 : vector<8x32xf32>
    %cst_9 = arith.constant 9.99999996E-13 : f32
    %17 = vector.broadcast %cst_9 : f32 to vector<8x1xf32>
    %18 = arith.addf %14, %17 : vector<8x1xf32>
    %19 = math.rsqrt %18 : vector<8x1xf32>
    %20 = vector.broadcast %19 : vector<8x1xf32> to vector<8x32xf32>
    %21 = arith.mulf %16, %20 : vector<8x32xf32>
    %22 = vector.broadcast %2 : vector<1x32xf32> to vector<8x32xf32>
    %23 = arith.mulf %21, %22 : vector<8x32xf32>
    %24 = vector.broadcast %3 : vector<1x32xf32> to vector<8x32xf32>
    %25 = arith.addf %23, %24 : vector<8x32xf32>
    %c0_10 = arith.constant 0 : index
    %c0_11 = arith.constant 0 : index
    %c0_12 = arith.constant 0 : index
    %26 = vector.load %arg2[%c0_10, %c0_11, %c0_12] : memref<1x1x8xf32, #tpu.memory_space<vmem>>, vector<1x1x8xf32>
    %27 = vector.shape_cast %26 : vector<1x1x8xf32> to vector<1x8xf32>
    %c0_13 = arith.constant 0 : index
    %c0_14 = arith.constant 0 : index
    %c0_15 = arith.constant 0 : index
    %28 = vector.load %arg5[%c0_13, %c0_14, %c0_15] : memref<2x32x96xf32, #tpu.memory_space<vmem>>, vector<1x32x96xf32>
    %29 = vector.shape_cast %28 : vector<1x32x96xf32> to vector<32x96xf32>
    %cst_16 = arith.constant dense<0.000000e+00> : vector<8x96xf32>
    %30 = tpu.matmul %25, %29, %cst_16 {dimension_numbers = #tpu.dot_dimension_numbers<[1], [0], [0], [1], [0, 0, 1, 1], [], []>} : vector<8x32xf32>, vector<32x96xf32>, vector<8x96xf32> -> vector<8x96xf32>
    %c0_17 = arith.constant 0 : index
    %c0_18 = arith.constant 0 : index
    %c0_19 = arith.constant 0 : index
    %31 = vector.load %arg6[%c0_17, %c0_18, %c0_19] : memref<2x1x96xf32, #tpu.memory_space<vmem>>, vector<1x1x96xf32>
    %32 = vector.shape_cast %31 : vector<1x1x96xf32> to vector<1x96xf32>
    %33 = vector.broadcast %32 : vector<1x96xf32> to vector<8x96xf32>
    %34 = arith.addf %30, %33 : vector<8x96xf32>
    %c0_20 = arith.constant 0 : index
    %c0_21 = arith.constant 0 : index
    %c0_22 = arith.constant 0 : index
    %35 = vector.load %arg7[%c0_20, %c0_21, %c0_22] : memref<2x32x32xf32, #tpu.memory_space<vmem>>, vector<1x32x32xf32>
    %36 = vector.shape_cast %35 : vector<1x32x32xf32> to vector<32x32xf32>
    %c0_23 = arith.constant 0 : index
    %c0_24 = arith.constant 0 : index
    %c0_25 = arith.constant 0 : index
    %37 = vector.load %arg8[%c0_23, %c0_24, %c0_25] : memref<2x1x32xf32, #tpu.memory_space<vmem>>, vector<1x1x32xf32>
    %38 = vector.shape_cast %37 : vector<1x1x32xf32> to vector<1x32xf32>
    %39 = vector.extract_strided_slice %34 {offsets = [0, 0], sizes = [8, 16], strides = [1, 1]} : vector<8x96xf32> to vector<8x16xf32>
    %40 = vector.extract_strided_slice %34 {offsets = [0, 32], sizes = [8, 16], strides = [1, 1]} : vector<8x96xf32> to vector<8x16xf32>
    %41 = vector.extract_strided_slice %34 {offsets = [0, 64], sizes = [8, 16], strides = [1, 1]} : vector<8x96xf32> to vector<8x16xf32>
    %cst_26 = arith.constant dense<0.000000e+00> : vector<8x8xf32>
    %42 = tpu.matmul %39, %40, %cst_26 {dimension_numbers = #tpu.dot_dimension_numbers<[1], [1], [0], [0], [0, 0, 1, 0], [], []>} : vector<8x16xf32>, vector<8x16xf32>, vector<8x8xf32> -> vector<8x8xf32>
    %43 = vector.broadcast %27 : vector<1x8xf32> to vector<8x8xf32>
    %44 = arith.addf %42, %43 : vector<8x8xf32>
    %45 = math.exp %44 : vector<8x8xf32>
    %cst_27 = arith.constant dense<0.000000e+00> : vector<8xf32>
    %46 = vector.multi_reduction <add>, %45, %cst_27 [1] : vector<8x8xf32> to vector<8xf32>
    %47 = vector.shape_cast %46 : vector<8xf32> to vector<8x1xf32>
    %48 = tpu.reciprocal %47 {approx = true} : vector<8x1xf32> -> vector<8x1xf32>
    %49 = vector.broadcast %48 : vector<8x1xf32> to vector<8x8xf32>
    %50 = arith.mulf %45, %49 : vector<8x8xf32>
    %cst_28 = arith.constant dense<0.000000e+00> : vector<8x16xf32>
    %51 = tpu.matmul %50, %41, %cst_28 {dimension_numbers = #tpu.dot_dimension_numbers<[1], [0], [0], [1], [0, 0, 1, 1], [], []>} : vector<8x8xf32>, vector<8x16xf32>, vector<8x16xf32> -> vector<8x16xf32>
    %52 = vector.extract_strided_slice %36 {offsets = [0, 0], sizes = [16, 32], strides = [1, 1]} : vector<32x32xf32> to vector<16x32xf32>
    %cst_29 = arith.constant dense<0.000000e+00> : vector<8x32xf32>
    %53 = tpu.matmul %51, %52, %cst_29 {dimension_numbers = #tpu.dot_dimension_numbers<[1], [0], [0], [1], [0, 0, 1, 1], [], []>} : vector<8x16xf32>, vector<16x32xf32>, vector<8x32xf32> -> vector<8x32xf32>
    %54 = vector.broadcast %38 : vector<1x32xf32> to vector<8x32xf32>
    %55 = arith.addf %54, %53 : vector<8x32xf32>
    %56 = vector.extract_strided_slice %34 {offsets = [0, 16], sizes = [8, 16], strides = [1, 1]} : vector<8x96xf32> to vector<8x16xf32>
    %57 = vector.extract_strided_slice %34 {offsets = [0, 48], sizes = [8, 16], strides = [1, 1]} : vector<8x96xf32> to vector<8x16xf32>
    %58 = vector.extract_strided_slice %34 {offsets = [0, 80], sizes = [8, 16], strides = [1, 1]} : vector<8x96xf32> to vector<8x16xf32>
    %cst_30 = arith.constant dense<0.000000e+00> : vector<8x8xf32>
    %59 = tpu.matmul %56, %57, %cst_30 {dimension_numbers = #tpu.dot_dimension_numbers<[1], [1], [0], [0], [0, 0, 1, 0], [], []>} : vector<8x16xf32>, vector<8x16xf32>, vector<8x8xf32> -> vector<8x8xf32>
    %60 = vector.broadcast %27 : vector<1x8xf32> to vector<8x8xf32>
    %61 = arith.addf %59, %60 : vector<8x8xf32>
    %62 = math.exp %61 : vector<8x8xf32>
    %cst_31 = arith.constant dense<0.000000e+00> : vector<8xf32>
    %63 = vector.multi_reduction <add>, %62, %cst_31 [1] : vector<8x8xf32> to vector<8xf32>
    %64 = vector.shape_cast %63 : vector<8xf32> to vector<8x1xf32>
    %65 = tpu.reciprocal %64 {approx = true} : vector<8x1xf32> -> vector<8x1xf32>
    %66 = vector.broadcast %65 : vector<8x1xf32> to vector<8x8xf32>
    %67 = arith.mulf %62, %66 : vector<8x8xf32>
    %cst_32 = arith.constant dense<0.000000e+00> : vector<8x16xf32>
    %68 = tpu.matmul %67, %58, %cst_32 {dimension_numbers = #tpu.dot_dimension_numbers<[1], [0], [0], [1], [0, 0, 1, 1], [], []>} : vector<8x8xf32>, vector<8x16xf32>, vector<8x16xf32> -> vector<8x16xf32>
    %69 = vector.extract_strided_slice %36 {offsets = [16, 0], sizes = [16, 32], strides = [1, 1]} : vector<32x32xf32> to vector<16x32xf32>
    %cst_33 = arith.constant dense<0.000000e+00> : vector<8x32xf32>
    %70 = tpu.matmul %68, %69, %cst_33 {dimension_numbers = #tpu.dot_dimension_numbers<[1], [0], [0], [1], [0, 0, 1, 1], [], []>} : vector<8x16xf32>, vector<16x32xf32>, vector<8x32xf32> -> vector<8x32xf32>
    %71 = arith.addf %55, %70 : vector<8x32xf32>
    %72 = arith.addf %71, %25 : vector<8x32xf32>
    %c0_34 = arith.constant 0 : index
    %c0_35 = arith.constant 0 : index
    %c0_36 = arith.constant 0 : index
    %73 = vector.load %arg9[%c0_34, %c0_35, %c0_36] : memref<2x1x32xf32, #tpu.memory_space<vmem>>, vector<1x1x32xf32>
    %74 = vector.shape_cast %73 : vector<1x1x32xf32> to vector<1x32xf32>
    %c0_37 = arith.constant 0 : index
    %c0_38 = arith.constant 0 : index
    %c0_39 = arith.constant 0 : index
    %75 = vector.load %arg10[%c0_37, %c0_38, %c0_39] : memref<2x1x32xf32, #tpu.memory_space<vmem>>, vector<1x1x32xf32>
    %76 = vector.shape_cast %75 : vector<1x1x32xf32> to vector<1x32xf32>
    %cst_40 = arith.constant dense<0.000000e+00> : vector<8xf32>
    %77 = vector.multi_reduction <add>, %72, %cst_40 [1] : vector<8x32xf32> to vector<8xf32>
    %78 = vector.shape_cast %77 : vector<8xf32> to vector<8x1xf32>
    %cst_41 = arith.constant 3.200000e+01 : f32
    %79 = vector.broadcast %cst_41 : f32 to vector<8x1xf32>
    %80 = arith.divf %78, %79 : vector<8x1xf32>
    %81 = arith.mulf %72, %72 : vector<8x32xf32>
    %cst_42 = arith.constant dense<0.000000e+00> : vector<8xf32>
    %82 = vector.multi_reduction <add>, %81, %cst_42 [1] : vector<8x32xf32> to vector<8xf32>
    %83 = vector.shape_cast %82 : vector<8xf32> to vector<8x1xf32>
    %cst_43 = arith.constant 3.200000e+01 : f32
    %84 = vector.broadcast %cst_43 : f32 to vector<8x1xf32>
    %85 = arith.divf %83, %84 : vector<8x1xf32>
    %86 = arith.mulf %80, %80 : vector<8x1xf32>
    %87 = arith.subf %85, %86 : vector<8x1xf32>
    %88 = vector.broadcast %80 : vector<8x1xf32> to vector<8x32xf32>
    %89 = arith.subf %72, %88 : vector<8x32xf32>
    %cst_44 = arith.constant 9.99999996E-13 : f32
    %90 = vector.broadcast %cst_44 : f32 to vector<8x1xf32>
    %91 = arith.addf %87, %90 : vector<8x1xf32>
    %92 = math.rsqrt %91 : vector<8x1xf32>
    %93 = vector.broadcast %92 : vector<8x1xf32> to vector<8x32xf32>
    %94 = arith.mulf %89, %93 : vector<8x32xf32>
    %95 = vector.broadcast %74 : vector<1x32xf32> to vector<8x32xf32>
    %96 = arith.mulf %94, %95 : vector<8x32xf32>
    %97 = vector.broadcast %76 : vector<1x32xf32> to vector<8x32xf32>
    %98 = arith.addf %96, %97 : vector<8x32xf32>
    %c0_45 = arith.constant 0 : index
    %c0_46 = arith.constant 0 : index
    %c0_47 = arith.constant 0 : index
    %99 = vector.load %arg11[%c0_45, %c0_46, %c0_47] : memref<2x32x64xf32, #tpu.memory_space<vmem>>, vector<1x32x64xf32>
    %100 = vector.shape_cast %99 : vector<1x32x64xf32> to vector<32x64xf32>
    %cst_48 = arith.constant dense<0.000000e+00> : vector<8x64xf32>
    %101 = tpu.matmul %98, %100, %cst_48 {dimension_numbers = #tpu.dot_dimension_numbers<[1], [0], [0], [1], [0, 0, 1, 1], [], []>} : vector<8x32xf32>, vector<32x64xf32>, vector<8x64xf32> -> vector<8x64xf32>
    %c0_49 = arith.constant 0 : index
    %c0_50 = arith.constant 0 : index
    %c0_51 = arith.constant 0 : index
    %102 = vector.load %arg12[%c0_49, %c0_50, %c0_51] : memref<2x1x64xf32, #tpu.memory_space<vmem>>, vector<1x1x64xf32>
    %103 = vector.shape_cast %102 : vector<1x1x64xf32> to vector<1x64xf32>
    %104 = vector.broadcast %103 : vector<1x64xf32> to vector<8x64xf32>
    %105 = arith.addf %101, %104 : vector<8x64xf32>
    %cst_52 = arith.constant 5.000000e-01 : f32
    %106 = vector.broadcast %cst_52 : f32 to vector<8x64xf32>
    %107 = arith.mulf %106, %105 : vector<8x64xf32>
    %cst_53 = arith.constant 4.471500e-02 : f32
    %108 = vector.broadcast %cst_53 : f32 to vector<8x64xf32>
    %109 = arith.mulf %108, %105 : vector<8x64xf32>
    %110 = arith.mulf %109, %105 : vector<8x64xf32>
    %111 = arith.mulf %110, %105 : vector<8x64xf32>
    %112 = arith.addf %105, %111 : vector<8x64xf32>
    %cst_54 = arith.constant 0.797884583 : f32
    %113 = vector.broadcast %cst_54 : f32 to vector<8x64xf32>
    %114 = arith.mulf %113, %112 : vector<8x64xf32>
    %115 = math.tanh %114 : vector<8x64xf32>
    %cst_55 = arith.constant 1.000000e+00 : f32
    %116 = vector.broadcast %cst_55 : f32 to vector<8x64xf32>
    %117 = arith.addf %116, %115 : vector<8x64xf32>
    %118 = arith.mulf %107, %117 : vector<8x64xf32>
    %c0_56 = arith.constant 0 : index
    %c0_57 = arith.constant 0 : index
    %c0_58 = arith.constant 0 : index
    %119 = vector.load %arg13[%c0_56, %c0_57, %c0_58] : memref<2x64x32xf32, #tpu.memory_space<vmem>>, vector<1x64x32xf32>
    %120 = vector.shape_cast %119 : vector<1x64x32xf32> to vector<64x32xf32>
    %cst_59 = arith.constant dense<0.000000e+00> : vector<8x32xf32>
    %121 = tpu.matmul %118, %120, %cst_59 {dimension_numbers = #tpu.dot_dimension_numbers<[1], [0], [0], [1], [0, 0, 1, 1], [], []>} : vector<8x64xf32>, vector<64x32xf32>, vector<8x32xf32> -> vector<8x32xf32>
    %c0_60 = arith.constant 0 : index
    %c0_61 = arith.constant 0 : index
    %c0_62 = arith.constant 0 : index
    %122 = vector.load %arg14[%c0_60, %c0_61, %c0_62] : memref<2x1x32xf32, #tpu.memory_space<vmem>>, vector<1x1x32xf32>
    %123 = vector.shape_cast %122 : vector<1x1x32xf32> to vector<1x32xf32>
    %124 = vector.broadcast %123 : vector<1x32xf32> to vector<8x32xf32>
    %125 = arith.addf %121, %124 : vector<8x32xf32>
    %126 = arith.addf %125, %98 : vector<8x32xf32>
    %c0_63 = arith.constant 0 : index
    %c0_64 = arith.constant 0 : index
    %c0_65 = arith.constant 0 : index
    %127 = vector.load %arg15[%c0_63, %c0_64, %c0_65] : memref<2x1x32xf32, #tpu.memory_space<vmem>>, vector<1x1x32xf32>
    %128 = vector.shape_cast %127 : vector<1x1x32xf32> to vector<1x32xf32>
    %c0_66 = arith.constant 0 : index
    %c0_67 = arith.constant 0 : index
    %c0_68 = arith.constant 0 : index
    %129 = vector.load %arg16[%c0_66, %c0_67, %c0_68] : memref<2x1x32xf32, #tpu.memory_space<vmem>>, vector<1x1x32xf32>
    %130 = vector.shape_cast %129 : vector<1x1x32xf32> to vector<1x32xf32>
    %cst_69 = arith.constant dense<0.000000e+00> : vector<8xf32>
    %131 = vector.multi_reduction <add>, %126, %cst_69 [1] : vector<8x32xf32> to vector<8xf32>
    %132 = vector.shape_cast %131 : vector<8xf32> to vector<8x1xf32>
    %cst_70 = arith.constant 3.200000e+01 : f32
    %133 = vector.broadcast %cst_70 : f32 to vector<8x1xf32>
    %134 = arith.divf %132, %133 : vector<8x1xf32>
    %135 = arith.mulf %126, %126 : vector<8x32xf32>
    %cst_71 = arith.constant dense<0.000000e+00> : vector<8xf32>
    %136 = vector.multi_reduction <add>, %135, %cst_71 [1] : vector<8x32xf32> to vector<8xf32>
    %137 = vector.shape_cast %136 : vector<8xf32> to vector<8x1xf32>
    %cst_72 = arith.constant 3.200000e+01 : f32
    %138 = vector.broadcast %cst_72 : f32 to vector<8x1xf32>
    %139 = arith.divf %137, %138 : vector<8x1xf32>
    %140 = arith.mulf %134, %134 : vector<8x1xf32>
    %141 = arith.subf %139, %140 : vector<8x1xf32>
    %142 = vector.broadcast %134 : vector<8x1xf32> to vector<8x32xf32>
    %143 = arith.subf %126, %142 : vector<8x32xf32>
    %cst_73 = arith.constant 9.99999996E-13 : f32
    %144 = vector.broadcast %cst_73 : f32 to vector<8x1xf32>
    %145 = arith.addf %141, %144 : vector<8x1xf32>
    %146 = math.rsqrt %145 : vector<8x1xf32>
    %147 = vector.broadcast %146 : vector<8x1xf32> to vector<8x32xf32>
    %148 = arith.mulf %143, %147 : vector<8x32xf32>
    %149 = vector.broadcast %128 : vector<1x32xf32> to vector<8x32xf32>
    %150 = arith.mulf %148, %149 : vector<8x32xf32>
    %151 = vector.broadcast %130 : vector<1x32xf32> to vector<8x32xf32>
    %152 = arith.addf %150, %151 : vector<8x32xf32>
    %c1 = arith.constant 1 : index
    %c0_74 = arith.constant 0 : index
    %c0_75 = arith.constant 0 : index
    %153 = vector.load %arg5[%c1, %c0_74, %c0_75] : memref<2x32x96xf32, #tpu.memory_space<vmem>>, vector<1x32x96xf32>
    %154 = vector.shape_cast %153 : vector<1x32x96xf32> to vector<32x96xf32>
    %cst_76 = arith.constant dense<0.000000e+00> : vector<8x96xf32>
    %155 = tpu.matmul %152, %154, %cst_76 {dimension_numbers = #tpu.dot_dimension_numbers<[1], [0], [0], [1], [0, 0, 1, 1], [], []>} : vector<8x32xf32>, vector<32x96xf32>, vector<8x96xf32> -> vector<8x96xf32>
    %c1_77 = arith.constant 1 : index
    %c0_78 = arith.constant 0 : index
    %c0_79 = arith.constant 0 : index
    %156 = vector.load %arg6[%c1_77, %c0_78, %c0_79] : memref<2x1x96xf32, #tpu.memory_space<vmem>>, vector<1x1x96xf32>
    %157 = vector.shape_cast %156 : vector<1x1x96xf32> to vector<1x96xf32>
    %158 = vector.broadcast %157 : vector<1x96xf32> to vector<8x96xf32>
    %159 = arith.addf %155, %158 : vector<8x96xf32>
    %c1_80 = arith.constant 1 : index
    %c0_81 = arith.constant 0 : index
    %c0_82 = arith.constant 0 : index
    %160 = vector.load %arg7[%c1_80, %c0_81, %c0_82] : memref<2x32x32xf32, #tpu.memory_space<vmem>>, vector<1x32x32xf32>
    %161 = vector.shape_cast %160 : vector<1x32x32xf32> to vector<32x32xf32>
    %c1_83 = arith.constant 1 : index
    %c0_84 = arith.constant 0 : index
    %c0_85 = arith.constant 0 : index
    %162 = vector.load %arg8[%c1_83, %c0_84, %c0_85] : memref<2x1x32xf32, #tpu.memory_space<vmem>>, vector<1x1x32xf32>
    %163 = vector.shape_cast %162 : vector<1x1x32xf32> to vector<1x32xf32>
    %164 = vector.extract_strided_slice %159 {offsets = [0, 0], sizes = [8, 16], strides = [1, 1]} : vector<8x96xf32> to vector<8x16xf32>
    %165 = vector.extract_strided_slice %159 {offsets = [0, 32], sizes = [8, 16], strides = [1, 1]} : vector<8x96xf32> to vector<8x16xf32>
    %166 = vector.extract_strided_slice %159 {offsets = [0, 64], sizes = [8, 16], strides = [1, 1]} : vector<8x96xf32> to vector<8x16xf32>
    %cst_86 = arith.constant dense<0.000000e+00> : vector<8x8xf32>
    %167 = tpu.matmul %164, %165, %cst_86 {dimension_numbers = #tpu.dot_dimension_numbers<[1], [1], [0], [0], [0, 0, 1, 0], [], []>} : vector<8x16xf32>, vector<8x16xf32>, vector<8x8xf32> -> vector<8x8xf32>
    %168 = vector.broadcast %27 : vector<1x8xf32> to vector<8x8xf32>
    %169 = arith.addf %167, %168 : vector<8x8xf32>
    %170 = math.exp %169 : vector<8x8xf32>
    %cst_87 = arith.constant dense<0.000000e+00> : vector<8xf32>
    %171 = vector.multi_reduction <add>, %170, %cst_87 [1] : vector<8x8xf32> to vector<8xf32>
    %172 = vector.shape_cast %171 : vector<8xf32> to vector<8x1xf32>
    %173 = tpu.reciprocal %172 {approx = true} : vector<8x1xf32> -> vector<8x1xf32>
    %174 = vector.broadcast %173 : vector<8x1xf32> to vector<8x8xf32>
    %175 = arith.mulf %170, %174 : vector<8x8xf32>
    %cst_88 = arith.constant dense<0.000000e+00> : vector<8x16xf32>
    %176 = tpu.matmul %175, %166, %cst_88 {dimension_numbers = #tpu.dot_dimension_numbers<[1], [0], [0], [1], [0, 0, 1, 1], [], []>} : vector<8x8xf32>, vector<8x16xf32>, vector<8x16xf32> -> vector<8x16xf32>
    %177 = vector.extract_strided_slice %161 {offsets = [0, 0], sizes = [16, 32], strides = [1, 1]} : vector<32x32xf32> to vector<16x32xf32>
    %cst_89 = arith.constant dense<0.000000e+00> : vector<8x32xf32>
    %178 = tpu.matmul %176, %177, %cst_89 {dimension_numbers = #tpu.dot_dimension_numbers<[1], [0], [0], [1], [0, 0, 1, 1], [], []>} : vector<8x16xf32>, vector<16x32xf32>, vector<8x32xf32> -> vector<8x32xf32>
    %179 = vector.broadcast %163 : vector<1x32xf32> to vector<8x32xf32>
    %180 = arith.addf %179, %178 : vector<8x32xf32>
    %181 = vector.extract_strided_slice %159 {offsets = [0, 16], sizes = [8, 16], strides = [1, 1]} : vector<8x96xf32> to vector<8x16xf32>
    %182 = vector.extract_strided_slice %159 {offsets = [0, 48], sizes = [8, 16], strides = [1, 1]} : vector<8x96xf32> to vector<8x16xf32>
    %183 = vector.extract_strided_slice %159 {offsets = [0, 80], sizes = [8, 16], strides = [1, 1]} : vector<8x96xf32> to vector<8x16xf32>
    %cst_90 = arith.constant dense<0.000000e+00> : vector<8x8xf32>
    %184 = tpu.matmul %181, %182, %cst_90 {dimension_numbers = #tpu.dot_dimension_numbers<[1], [1], [0], [0], [0, 0, 1, 0], [], []>} : vector<8x16xf32>, vector<8x16xf32>, vector<8x8xf32> -> vector<8x8xf32>
    %185 = vector.broadcast %27 : vector<1x8xf32> to vector<8x8xf32>
    %186 = arith.addf %184, %185 : vector<8x8xf32>
    %187 = math.exp %186 : vector<8x8xf32>
    %cst_91 = arith.constant dense<0.000000e+00> : vector<8xf32>
    %188 = vector.multi_reduction <add>, %187, %cst_91 [1] : vector<8x8xf32> to vector<8xf32>
    %189 = vector.shape_cast %188 : vector<8xf32> to vector<8x1xf32>
    %190 = tpu.reciprocal %189 {approx = true} : vector<8x1xf32> -> vector<8x1xf32>
    %191 = vector.broadcast %190 : vector<8x1xf32> to vector<8x8xf32>
    %192 = arith.mulf %187, %191 : vector<8x8xf32>
    %cst_92 = arith.constant dense<0.000000e+00> : vector<8x16xf32>
    %193 = tpu.matmul %192, %183, %cst_92 {dimension_numbers = #tpu.dot_dimension_numbers<[1], [0], [0], [1], [0, 0, 1, 1], [], []>} : vector<8x8xf32>, vector<8x16xf32>, vector<8x16xf32> -> vector<8x16xf32>
    %194 = vector.extract_strided_slice %161 {offsets = [16, 0], sizes = [16, 32], strides = [1, 1]} : vector<32x32xf32> to vector<16x32xf32>
    %cst_93 = arith.constant dense<0.000000e+00> : vector<8x32xf32>
    %195 = tpu.matmul %193, %194, %cst_93 {dimension_numbers = #tpu.dot_dimension_numbers<[1], [0], [0], [1], [0, 0, 1, 1], [], []>} : vector<8x16xf32>, vector<16x32xf32>, vector<8x32xf32> -> vector<8x32xf32>
    %196 = arith.addf %180, %195 : vector<8x32xf32>
    %197 = arith.addf %196, %152 : vector<8x32xf32>
    %c1_94 = arith.constant 1 : index
    %c0_95 = arith.constant 0 : index
    %c0_96 = arith.constant 0 : index
    %198 = vector.load %arg9[%c1_94, %c0_95, %c0_96] : memref<2x1x32xf32, #tpu.memory_space<vmem>>, vector<1x1x32xf32>
    %199 = vector.shape_cast %198 : vector<1x1x32xf32> to vector<1x32xf32>
    %c1_97 = arith.constant 1 : index
    %c0_98 = arith.constant 0 : index
    %c0_99 = arith.constant 0 : index
    %200 = vector.load %arg10[%c1_97, %c0_98, %c0_99] : memref<2x1x32xf32, #tpu.memory_space<vmem>>, vector<1x1x32xf32>
    %201 = vector.shape_cast %200 : vector<1x1x32xf32> to vector<1x32xf32>
    %cst_100 = arith.constant dense<0.000000e+00> : vector<8xf32>
    %202 = vector.multi_reduction <add>, %197, %cst_100 [1] : vector<8x32xf32> to vector<8xf32>
    %203 = vector.shape_cast %202 : vector<8xf32> to vector<8x1xf32>
    %cst_101 = arith.constant 3.200000e+01 : f32
    %204 = vector.broadcast %cst_101 : f32 to vector<8x1xf32>
    %205 = arith.divf %203, %204 : vector<8x1xf32>
    %206 = arith.mulf %197, %197 : vector<8x32xf32>
    %cst_102 = arith.constant dense<0.000000e+00> : vector<8xf32>
    %207 = vector.multi_reduction <add>, %206, %cst_102 [1] : vector<8x32xf32> to vector<8xf32>
    %208 = vector.shape_cast %207 : vector<8xf32> to vector<8x1xf32>
    %cst_103 = arith.constant 3.200000e+01 : f32
    %209 = vector.broadcast %cst_103 : f32 to vector<8x1xf32>
    %210 = arith.divf %208, %209 : vector<8x1xf32>
    %211 = arith.mulf %205, %205 : vector<8x1xf32>
    %212 = arith.subf %210, %211 : vector<8x1xf32>
    %213 = vector.broadcast %205 : vector<8x1xf32> to vector<8x32xf32>
    %214 = arith.subf %197, %213 : vector<8x32xf32>
    %cst_104 = arith.constant 9.99999996E-13 : f32
    %215 = vector.broadcast %cst_104 : f32 to vector<8x1xf32>
    %216 = arith.addf %212, %215 : vector<8x1xf32>
    %217 = math.rsqrt %216 : vector<8x1xf32>
    %218 = vector.broadcast %217 : vector<8x1xf32> to vector<8x32xf32>
    %219 = arith.mulf %214, %218 : vector<8x32xf32>
    %220 = vector.broadcast %199 : vector<1x32xf32> to vector<8x32xf32>
    %221 = arith.mulf %219, %220 : vector<8x32xf32>
    %222 = vector.broadcast %201 : vector<1x32xf32> to vector<8x32xf32>
    %223 = arith.addf %221, %222 : vector<8x32xf32>
    %c1_105 = arith.constant 1 : index
    %c0_106 = arith.constant 0 : index
    %c0_107 = arith.constant 0 : index
    %224 = vector.load %arg11[%c1_105, %c0_106, %c0_107] : memref<2x32x64xf32, #tpu.memory_space<vmem>>, vector<1x32x64xf32>
    %225 = vector.shape_cast %224 : vector<1x32x64xf32> to vector<32x64xf32>
    %cst_108 = arith.constant dense<0.000000e+00> : vector<8x64xf32>
    %226 = tpu.matmul %223, %225, %cst_108 {dimension_numbers = #tpu.dot_dimension_numbers<[1], [0], [0], [1], [0, 0, 1, 1], [], []>} : vector<8x32xf32>, vector<32x64xf32>, vector<8x64xf32> -> vector<8x64xf32>
    %c1_109 = arith.constant 1 : index
    %c0_110 = arith.constant 0 : index
    %c0_111 = arith.constant 0 : index
    %227 = vector.load %arg12[%c1_109, %c0_110, %c0_111] : memref<2x1x64xf32, #tpu.memory_space<vmem>>, vector<1x1x64xf32>
    %228 = vector.shape_cast %227 : vector<1x1x64xf32> to vector<1x64xf32>
    %229 = vector.broadcast %228 : vector<1x64xf32> to vector<8x64xf32>
    %230 = arith.addf %226, %229 : vector<8x64xf32>
    %cst_112 = arith.constant 5.000000e-01 : f32
    %231 = vector.broadcast %cst_112 : f32 to vector<8x64xf32>
    %232 = arith.mulf %231, %230 : vector<8x64xf32>
    %cst_113 = arith.constant 4.471500e-02 : f32
    %233 = vector.broadcast %cst_113 : f32 to vector<8x64xf32>
    %234 = arith.mulf %233, %230 : vector<8x64xf32>
    %235 = arith.mulf %234, %230 : vector<8x64xf32>
    %236 = arith.mulf %235, %230 : vector<8x64xf32>
    %237 = arith.addf %230, %236 : vector<8x64xf32>
    %cst_114 = arith.constant 0.797884583 : f32
    %238 = vector.broadcast %cst_114 : f32 to vector<8x64xf32>
    %239 = arith.mulf %238, %237 : vector<8x64xf32>
    %240 = math.tanh %239 : vector<8x64xf32>
    %cst_115 = arith.constant 1.000000e+00 : f32
    %241 = vector.broadcast %cst_115 : f32 to vector<8x64xf32>
    %242 = arith.addf %241, %240 : vector<8x64xf32>
    %243 = arith.mulf %232, %242 : vector<8x64xf32>
    %c1_116 = arith.constant 1 : index
    %c0_117 = arith.constant 0 : index
    %c0_118 = arith.constant 0 : index
    %244 = vector.load %arg13[%c1_116, %c0_117, %c0_118] : memref<2x64x32xf32, #tpu.memory_space<vmem>>, vector<1x64x32xf32>
    %245 = vector.shape_cast %244 : vector<1x64x32xf32> to vector<64x32xf32>
    %cst_119 = arith.constant dense<0.000000e+00> : vector<8x32xf32>
    %246 = tpu.matmul %243, %245, %cst_119 {dimension_numbers = #tpu.dot_dimension_numbers<[1], [0], [0], [1], [0, 0, 1, 1], [], []>} : vector<8x64xf32>, vector<64x32xf32>, vector<8x32xf32> -> vector<8x32xf32>
    %c1_120 = arith.constant 1 : index
    %c0_121 = arith.constant 0 : index
    %c0_122 = arith.constant 0 : index
    %247 = vector.load %arg14[%c1_120, %c0_121, %c0_122] : memref<2x1x32xf32, #tpu.memory_space<vmem>>, vector<1x1x32xf32>
    %248 = vector.shape_cast %247 : vector<1x1x32xf32> to vector<1x32xf32>
    %249 = vector.broadcast %248 : vector<1x32xf32> to vector<8x32xf32>
    %250 = arith.addf %246, %249 : vector<8x32xf32>
    %251 = arith.addf %250, %223 : vector<8x32xf32>
    %c1_123 = arith.constant 1 : index
    %c0_124 = arith.constant 0 : index
    %c0_125 = arith.constant 0 : index
    %252 = vector.load %arg15[%c1_123, %c0_124, %c0_125] : memref<2x1x32xf32, #tpu.memory_space<vmem>>, vector<1x1x32xf32>
    %253 = vector.shape_cast %252 : vector<1x1x32xf32> to vector<1x32xf32>
    %c1_126 = arith.constant 1 : index
    %c0_127 = arith.constant 0 : index
    %c0_128 = arith.constant 0 : index
    %254 = vector.load %arg16[%c1_126, %c0_127, %c0_128] : memref<2x1x32xf32, #tpu.memory_space<vmem>>, vector<1x1x32xf32>
    %255 = vector.shape_cast %254 : vector<1x1x32xf32> to vector<1x32xf32>
    %cst_129 = arith.constant dense<0.000000e+00> : vector<8xf32>
    %256 = vector.multi_reduction <add>, %251, %cst_129 [1] : vector<8x32xf32> to vector<8xf32>
    %257 = vector.shape_cast %256 : vector<8xf32> to vector<8x1xf32>
    %cst_130 = arith.constant 3.200000e+01 : f32
    %258 = vector.broadcast %cst_130 : f32 to vector<8x1xf32>
    %259 = arith.divf %257, %258 : vector<8x1xf32>
    %260 = arith.mulf %251, %251 : vector<8x32xf32>
    %cst_131 = arith.constant dense<0.000000e+00> : vector<8xf32>
    %261 = vector.multi_reduction <add>, %260, %cst_131 [1] : vector<8x32xf32> to vector<8xf32>
    %262 = vector.shape_cast %261 : vector<8xf32> to vector<8x1xf32>
    %cst_132 = arith.constant 3.200000e+01 : f32
    %263 = vector.broadcast %cst_132 : f32 to vector<8x1xf32>
    %264 = arith.divf %262, %263 : vector<8x1xf32>
    %265 = arith.mulf %259, %259 : vector<8x1xf32>
    %266 = arith.subf %264, %265 : vector<8x1xf32>
    %267 = vector.broadcast %259 : vector<8x1xf32> to vector<8x32xf32>
    %268 = arith.subf %251, %267 : vector<8x32xf32>
    %cst_133 = arith.constant 9.99999996E-13 : f32
    %269 = vector.broadcast %cst_133 : f32 to vector<8x1xf32>
    %270 = arith.addf %266, %269 : vector<8x1xf32>
    %271 = math.rsqrt %270 : vector<8x1xf32>
    %272 = vector.broadcast %271 : vector<8x1xf32> to vector<8x32xf32>
    %273 = arith.mulf %268, %272 : vector<8x32xf32>
    %274 = vector.broadcast %253 : vector<1x32xf32> to vector<8x32xf32>
    %275 = arith.mulf %273, %274 : vector<8x32xf32>
    %276 = vector.broadcast %255 : vector<1x32xf32> to vector<8x32xf32>
    %277 = arith.addf %275, %276 : vector<8x32xf32>
    %c0_134 = arith.constant 0 : index
    %c0_135 = arith.constant 0 : index
    %278 = vector.load %arg17[%c0_134, %c0_135] : memref<32x32xf32, #tpu.memory_space<vmem>>, vector<32x32xf32>
    %cst_136 = arith.constant dense<0.000000e+00> : vector<8x32xf32>
    %279 = tpu.matmul %277, %278, %cst_136 {dimension_numbers = #tpu.dot_dimension_numbers<[1], [0], [0], [1], [0, 0, 1, 1], [], []>} : vector<8x32xf32>, vector<32x32xf32>, vector<8x32xf32> -> vector<8x32xf32>
    %c0_137 = arith.constant 0 : index
    %c0_138 = arith.constant 0 : index
    %280 = vector.load %arg18[%c0_137, %c0_138] : memref<1x32xf32, #tpu.memory_space<vmem>>, vector<1x32xf32>
    %281 = vector.broadcast %280 : vector<1x32xf32> to vector<8x32xf32>
    %282 = arith.addf %279, %281 : vector<8x32xf32>
    %283 = math.tanh %282 : vector<8x32xf32>
    %c0_139 = arith.constant 0 : index
    %c0_140 = arith.constant 0 : index
    %284 = vector.load %arg19[%c0_139, %c0_140] : memref<32x128xf32, #tpu.memory_space<vmem>>, vector<32x128xf32>
    %cst_141 = arith.constant dense<0.000000e+00> : vector<8x128xf32>
    %285 = tpu.matmul %283, %284, %cst_141 {dimension_numbers = #tpu.dot_dimension_numbers<[1], [0], [0], [1], [0, 0, 1, 1], [], []>} : vector<8x32xf32>, vector<32x128xf32>, vector<8x128xf32> -> vector<8x128xf32>
    %c0_142 = arith.constant 0 : index
    %c0_143 = arith.constant 0 : index
    %286 = vector.load %arg20[%c0_142, %c0_143] : memref<1x128xf32, #tpu.memory_space<vmem>>, vector<1x128xf32>
    %287 = vector.broadcast %286 : vector<1x128xf32> to vector<8x128xf32>
    %288 = arith.addf %285, %287 : vector<8x128xf32>
    %c0_144 = arith.constant 0 : index
    %c0_145 = arith.constant 0 : index
    %c0_146 = arith.constant 0 : index
    %289 = vector.load %arg21[%c0_144, %c0_145, %c0_146] : memref<1x8x128xf32, #tpu.memory_space<vmem>>, vector<1x8x128xf32>
    %290 = vector.shape_cast %289 : vector<1x8x128xf32> to vector<8x128xf32>
    %291 = vector.shape_cast %288 : vector<8x128xf32> to vector<1x8x128xf32>
    tpu.vector_store %arg21[%c0_144, %c0_145, %c0_146], %291 {strides = array<i32>} : memref<1x8x128xf32, #tpu.memory_space<vmem>>, vector<1x8x128xf32>,
    return
  }
  func.func @transform_0(%arg0: i32) -> (i32, i32, i32) {
    %c0_i32 = arith.constant 0 : i32
    %c0_i32_0 = arith.constant 0 : i32
    %c0_i32_1 = arith.constant 0 : i32
    return %arg0, %c0_i32, %c0_i32_0 : i32, i32, i32
  }
  func.func @transform_1(%arg0: i32) -> (i32, i32, i32) {
    %c0_i32 = arith.constant 0 : i32
    %c0_i32_0 = arith.constant 0 : i32
    %c0_i32_1 = arith.constant 0 : i32
    return %arg0, %c0_i32, %c0_i32_0 : i32, i32, i32
  }
  func.func @transform_2(%arg0: i32) -> (i32, i32) {
    %c0_i32 = arith.constant 0 : i32
    %c0_i32_0 = arith.constant 0 : i32
    %c0_i32_1 = arith.constant 0 : i32
    return %c0_i32, %c0_i32_0 : i32, i32
  }
  func.func @transform_3(%arg0: i32) -> (i32, i32) {
    %c0_i32 = arith.constant 0 : i32
    %c0_i32_0 = arith.constant 0 : i32
    %c0_i32_1 = arith.constant 0 : i32
    return %c0_i32, %c0_i32_0 : i32, i32
  }
  func.func @transform_4(%arg0: i32) -> (i32, i32, i32) {
    %c0_i32 = arith.constant 0 : i32
    %c0_i32_0 = arith.constant 0 : i32
    %c0_i32_1 = arith.constant 0 : i32
    %c0_i32_2 = arith.constant 0 : i32
    return %c0_i32, %c0_i32_0, %c0_i32_1 : i32, i32, i32
  }
  func.func @transform_5(%arg0: i32) -> (i32, i32, i32) {
    %c0_i32 = arith.constant 0 : i32
    %c0_i32_0 = arith.constant 0 : i32
    %c0_i32_1 = arith.constant 0 : i32
    %c0_i32_2 = arith.constant 0 : i32
    return %c0_i32, %c0_i32_0, %c0_i32_1 : i32, i32, i32
  }
  func.func @transform_6(%arg0: i32) -> (i32, i32, i32) {
    %c0_i32 = arith.constant 0 : i32
    %c0_i32_0 = arith.constant 0 : i32
    %c0_i32_1 = arith.constant 0 : i32
    %c0_i32_2 = arith.constant 0 : i32
    return %c0_i32, %c0_i32_0, %c0_i32_1 : i32, i32, i32
  }
  func.func @transform_7(%arg0: i32) -> (i32, i32, i32) {
    %c0_i32 = arith.constant 0 : i32
    %c0_i32_0 = arith.constant 0 : i32
    %c0_i32_1 = arith.constant 0 : i32
    %c0_i32_2 = arith.constant 0 : i32
    return %c0_i32, %c0_i32_0, %c0_i32_1 : i32, i32, i32
  }
  func.func @transform_8(%arg0: i32) -> (i32, i32, i32) {
    %c0_i32 = arith.constant 0 : i32
    %c0_i32_0 = arith.constant 0 : i32
    %c0_i32_1 = arith.constant 0 : i32
    %c0_i32_2 = arith.constant 0 : i32
    return %c0_i32, %c0_i32_0, %c0_i32_1 : i32, i32, i32
  }
  func.func @transform_9(%arg0: i32) -> (i32, i32, i32) {
    %c0_i32 = arith.constant 0 : i32
    %c0_i32_0 = arith.constant 0 : i32
    %c0_i32_1 = arith.constant 0 : i32
    %c0_i32_2 = arith.constant 0 : i32
    return %c0_i32, %c0_i32_0, %c0_i32_1 : i32, i32, i32
  }
  func.func @transform_10(%arg0: i32) -> (i32, i32, i32) {
    %c0_i32 = arith.constant 0 : i32
    %c0_i32_0 = arith.constant 0 : i32
    %c0_i32_1 = arith.constant 0 : i32
    %c0_i32_2 = arith.constant 0 : i32
    return %c0_i32, %c0_i32_0, %c0_i32_1 : i32, i32, i32
  }
  func.func @transform_11(%arg0: i32) -> (i32, i32, i32) {
    %c0_i32 = arith.constant 0 : i32
    %c0_i32_0 = arith.constant 0 : i32
    %c0_i32_1 = arith.constant 0 : i32
    %c0_i32_2 = arith.constant 0 : i32
    return %c0_i32, %c0_i32_0, %c0_i32_1 : i32, i32, i32
  }
  func.func @transform_12(%arg0: i32) -> (i32, i32, i32) {
    %c0_i32 = arith.constant 0 : i32
    %c0_i32_0 = arith.constant 0 : i32
    %c0_i32_1 = arith.constant 0 : i32
    %c0_i32_2 = arith.constant 0 : i32
    return %c0_i32, %c0_i32_0, %c0_i32_1 : i32, i32, i32
  }
  func.func @transform_13(%arg0: i32) -> (i32, i32, i32) {
    %c0_i32 = arith.constant 0 : i32
    %c0_i32_0 = arith.constant 0 : i32
    %c0_i32_1 = arith.constant 0 : i32
    %c0_i32_2 = arith.constant 0 : i32
    return %c0_i32, %c0_i32_0, %c0_i32_1 : i32, i32, i32
  }
  func.func @transform_14(%arg0: i32) -> (i32, i32, i32) {
    %c0_i32 = arith.constant 0 : i32
    %c0_i32_0 = arith.constant 0 : i32
    %c0_i32_1 = arith.constant 0 : i32
    %c0_i32_2 = arith.constant 0 : i32
    return %c0_i32, %c0_i32_0, %c0_i32_1 : i32, i32, i32
  }
  func.func @transform_15(%arg0: i32) -> (i32, i32, i32) {
    %c0_i32 = arith.constant 0 : i32
    %c0_i32_0 = arith.constant 0 : i32
    %c0_i32_1 = arith.constant 0 : i32
    %c0_i32_2 = arith.constant 0 : i32
    return %c0_i32, %c0_i32_0, %c0_i32_1 : i32, i32, i32
  }
  func.func @transform_16(%arg0: i32) -> (i32, i32) {
    %c0_i32 = arith.constant 0 : i32
    %c0_i32_0 = arith.constant 0 : i32
    %c0_i32_1 = arith.constant 0 : i32
    return %c0_i32, %c0_i32_0 : i32, i32
  }
  func.func @transform_17(%arg0: i32) -> (i32, i32) {
    %c0_i32 = arith.constant 0 : i32
    %c0_i32_0 = arith.constant 0 : i32
    %c0_i32_1 = arith.constant 0 : i32
    return %c0_i32, %c0_i32_0 : i32, i32
  }
  func.func @transform_18(%arg0: i32) -> (i32, i32) {
    %c0_i32 = arith.constant 0 : i32
    %c0_i32_0 = arith.constant 0 : i32
    %c0_i32_1 = arith.constant 0 : i32
    return %c0_i32, %c0_i32_0 : i32, i32
  }
  func.func @transform_19(%arg0: i32) -> (i32, i32) {
    %c0_i32 = arith.constant 0 : i32
    %c0_i32_0 = arith.constant 0 : i32
    %c0_i32_1 = arith.constant 0 : i32
    return %c0_i32, %c0_i32_0 : i32, i32
  }
  func.func @transform_20(%arg0: i32) -> (i32, i32, i32) {
    %c0_i32 = arith.constant 0 : i32
    %c0_i32_0 = arith.constant 0 : i32
    %c0_i32_1 = arith.constant 0 : i32
    return %arg0, %c0_i32, %c0_i32_0 : i32, i32, i32
  }
}

</mosaic_0001>

<bundles_post_ra>
// kernel: tpu_custom_call.1
= control target key start
LH: loop header
LB: loop body
LE: loop exit
PB: predicated region body
PF: predicated region fallthrough
CT: control target
= control target key end

     0   :  { %s2924_s0 = inlined_call_operand.hbm [shape: f32[2,8,32], index: 0, kind: input, shape index: {}]   ;;  %s2925_s1 = inlined_call_operand.hbm [shape: f32[2,1,8], index: 1, kind: input, shape index: {}]   ;;  %s2926_s2 = inlined_call_operand.hbm [shape: f32[1,32], index: 2, kind: input, shape index: {}]   ;;  %s2927_s3 = inlined_call_operand.hbm [shape: f32[1,32], index: 3, kind: input, shape index: {}]   ;;  %s2928_s4 = inlined_call_operand.vmem [shape: f32[2,32,96], index: 4, kind: input, shape index: {}]   ;;  %s2929_s5 = inlined_call_operand.vmem [shape: f32[2,1,96], index: 5, kind: input, shape index: {}]   ;;  %s2930_s6 = inlined_call_operand.vmem [shape: f32[2,32,32], index: 6, kind: input, shape index: {}]   ;;  %s2931_s7 = inlined_call_operand.vmem [shape: f32[2,1,32], index: 7, kind: input, shape index: {}]   ;;  %s2932_s8 = inlined_call_operand.hbm [shape: f32[2,1,32], index: 8, kind: input, shape index: {}]   ;;  %s2933_s9 = inlined_call_operand.vmem [shape: f32[2,1,32], index: 9, kind: input, shape index: {}]   ;;  %s2934_s10 = inlined_call_operand.vmem [shape: f32[2,32,64], index: 10, kind: input, shape index: {}]   ;;  %s2935_s11 = inlined_call_operand.vmem [shape: f32[2,1,64], index: 11, kind: input, shape index: {}]   ;;  %s2936_s12 = inlined_call_operand.vmem [shape: f32[2,64,32], index: 12, kind: input, shape index: {}]   ;;  %s2937_s13 = inlined_call_operand.vmem [shape: f32[2,1,32], index: 13, kind: input, shape index: {}]   ;;  %s2938_s14 = inlined_call_operand.hbm [shape: f32[2,1,32], index: 14, kind: input, shape index: {}]   ;;  %s2939_s15 = inlined_call_operand.vmem [shape: f32[2,1,32], index: 15, kind: input, shape index: {}]   ;;  %s2940_s16 = inlined_call_operand.hbm [shape: f32[32,32], index: 16, kind: input, shape index: {}]   ;;  %s2941_s17 = inlined_call_operand.vmem [shape: f32[1,32], index: 17, kind: input, shape index: {}]   ;;  %s2942_s18 = inlined_call_operand.hbm [shape: f32[32,128], index: 18, kind: input, shape index: {}]   ;;  %s2943_s19 = inlined_call_operand.vmem [shape: f32[1,128], index: 19, kind: input, shape index: {}]   ;;  %s2944_s20 = inlined_call_operand.hbm [shape: f32[2,8,128], index: 20, kind: output, shape index: {}]  }
   0x1   :  { %2957 = sst [smem:[#allocation29_spill]] %s2924_s0 }
   0x2   :  { %2958 = sst [smem:[#allocation30_spill]] %s2925_s1 }
   0x3   :  { %2959 = sst [smem:[#allocation31_spill]] %s2926_s2 }
   0x4   :  { %2960 = sst [smem:[#allocation32_spill]] %s2927_s3 }
   0x5   :  { %2961 = sst [smem:[#allocation33_spill]] %s2928_s4 }
   0x6   :  { %2962 = sst [smem:[#allocation34_spill]] %s2932_s8 }
   0x7   :  { %2963 = sst [smem:[#allocation35_spill]] %s2935_s11 }
   0x8   :  { %2964 = sst [smem:[#allocation36_spill]] %s2937_s13 }
   0x9   :  { %2965 = sst [smem:[#allocation37_spill]] %s2938_s14 }
   0xa   :  { %2966 = sst [smem:[#allocation38_spill]] %s2939_s15 }
   0xb   :  { %2967 = sst [smem:[#allocation39_spill]] %s2940_s16 }
   0xc   :  { %2968 = sst [smem:[#allocation40_spill]] %s2941_s17 }
   0xd   :  { %2969 = sst [smem:[#allocation41_spill]] %s2942_s18 }
   0xe   :  { %2970 = sst [smem:[#allocation42_spill]] %s2943_s19 }
   0xf   :  { %2971 = sst [smem:[#allocation43_spill]] %s2944_s20 }
  0x10   :  { %25 = vsyncpa [#allocation3], 0 }
  0x11   :  { %27 = vsyncpa [#allocation3 + $0x1], 0 }
  0x12   :  { %28 = vsyncpa [#allocation6], 0 }
  0x13   :  { %30 = vsyncpa [#allocation6 + $0x1], 0 }
  0x14   :  { %31 = vsyncpa [#allocation9], 0 }
  0x15   :  { %32 = vsyncpa [#allocation12], 0 }
  0x16   :  { %33 = vsyncpa [#allocation15], 0 }
  0x17   :  { %34 = vsyncpa [#allocation4], 0 }
  0x18   :  { %36 = vsyncpa [#allocation4 + $0x1], 0  ;;  %s2471_s1 = smov 0   ;;  %s2473_s22 = smov 0  }
  0x19   :  { %s2475_s23 = smov 0   ;;  %s2477_s24 = smov 0  }
  0x1a LB: > { %2972 = sst [smem:[#allocation24_spill]] %s2336_s1  ;;  %s2495_s27 = sadd.s32 4294967295, %s2348_s24   ;;  %s2348_s24 = sphi %s2477_s24, %s3003_s24   ;;  %s2344_s23 = sphi %s2475_s23, %s3005_s23   ;;  %s2340_s22 = sphi %s2473_s22, %s3007_s22   ;;  %s2336_s1 = sphi %s2471_s1, %s3006_s1  }
  0x1b   : > { %2973 = sst [smem:[#allocation25_spill]] %s2344_s23  ;;  %p1772_p0 = scmp.ge.s32.totalorder %s2348_s24, 1 }
  0x1c   : > { %s2974_s3 = sld [smem:[#allocation31_spill]]  ;;  %p63_p1 = scmp.eq.s32.totalorder %s2495_s27, 0 }
  0x1d   : > { %p503_p2 = scmp.lt.s32.totalorder %s2348_s24, 3  ;;  %s2350_s4 = smov [#allocation7]  }
  0x1e   : > { %s517_s29 = sshll.u32 %s2350_s4, 4  ;;  %s2976_s21 = sld [smem:[#allocation32_spill]]  ;;  %s518_s29 = int_to_ptr.vmem [resolvable:$true] %s517_s29 }
  0x1f   : > { %p2500_p3 = pnand %p1772_p0, %p503_p2  ;;  %s2978_s14 = sld [smem:[#allocation37_spill]] }
  0x20   : > { %s2352_s0 = smov [#allocation11]   ;;  %s2979_s8 = sld [smem:[#allocation34_spill]] }
  0x21   : > { %p1875_p5 = pneg %p2500_p3  ;;  %s2353_s11 = smov 16  }
  0x22   : > { %s515_s26 = sshll.u32 %s2974_s3, 4  ;;  %s2351_s3 = smov [#allocation8]   ;;  %s516_s26 = int_to_ptr.hbm [resolvable:$true] %s515_s26 }
  0x23   : > { %p2512_p6 = pnand %p1875_p5, %p63_p1  ;;  %s529_s19 = sshll.u32 %s2351_s3, 4  ;;  %s530_s19 = int_to_ptr.vmem [resolvable:$true] %s529_s19 }
  0x24   : > { %s527_s2 = sshll.u32 %s2976_s21, 4  ;;  %s581_s21 = sshll.u32 %s2352_s0, 4  ;;  %s528_s2 = int_to_ptr.hbm [resolvable:$true] %s527_s2  ;;  %s582_s21 = int_to_ptr.vmem [resolvable:$true] %s581_s21 }
  0x25   : > { %1878 = dma.hbm_to_vmem [thread:$0]  (!%p2512_p6), %s516_s26, 16, %s518_s29, [#allocation6]  }
  0x26   : > { %1881 = dma.hbm_to_vmem [thread:$0]  (!%p2512_p6), %s528_s2, 16, %s530_s19, [#allocation9]  }
  0x27   : > { %s579_s30 = sshll.u32 %s2978_s14, 4  ;;  %s550_s13 = sshll.u32 %s2979_s8, 4  ;;  %s580_s30 = int_to_ptr.hbm [resolvable:$true] %s579_s30  ;;  %s551_s13 = int_to_ptr.hbm [resolvable:$true] %s550_s13 }
  0x28   : > { %s2354_s3 = smov 1   ;;  %s2355_s19 = smov [#allocation10]  }
  0x29   : > { %1887 = dma.hbm_to_vmem [thread:$0]  (!%p2512_p6), %s580_s30, 32, %s582_s21, [#allocation12], %s2353_s11, %s2353_s11, %s2354_s3  }
  0x2a   : > { %s552_s26 = sshll.u32 %s2355_s19, 4  ;;  %s2980_s16 = sld [smem:[#allocation39_spill]]  ;;  %s553_s26 = int_to_ptr.vmem [resolvable:$true] %s552_s26 }
  0x2b   : > { %1884 = dma.hbm_to_vmem [thread:$0]  (!%p2512_p6), %s551_s13, 32, %s553_s26, [#allocation9], %s2353_s11, %s2353_s11, %s2354_s3  }
  0x2c   : > { %s2356_s15 = smov [#allocation13]   ;;  %s2981_s18 = sld [smem:[#allocation41_spill]] }
  0x2d   : > { %s598_s17 = sshll.u32 %s2356_s15, 4  ;;  %s2357_s21 = smov 128   ;;  %s599_s17 = int_to_ptr.vmem [resolvable:$true] %s598_s17 }
  0x2e   : > { %s2358_s19 = smov 8   ;;  %s2359_s11 = smov [#allocation14]  }
  0x2f   : > { %s615_s13 = sshll.u32 %s2359_s11, 4  ;;  %s1771_s3 = sadd.s32 4294967294, %s2348_s24   ;;  %s616_s13 = int_to_ptr.vmem [resolvable:$true] %s615_s13 }
  0x30   : > { %s596_s2 = sshll.u32 %s2980_s16, 4  ;;  %s2542_s26 = sadd.s32 1, %s2348_s24   ;;  %s597_s2 = int_to_ptr.hbm [resolvable:$true] %s596_s2 }
  0x31   : > { %1890 = dma.hbm_to_vmem [thread:$0]  (!%p2512_p6), %s597_s2, 512, %s599_s17, [#allocation12], %s2357_s21, %s2357_s21, %s2358_s19  }
  0x32   : > { %s613_s0 = sshll.u32 %s2981_s18, 4  ;;  %2982 = sst [smem:[#allocation26_spill]] %s2542_s26  ;;  %s614_s0 = int_to_ptr.hbm [resolvable:$true] %s613_s0 }
  0x33   : > { %1893 = dma.hbm_to_vmem [thread:$0]  (!%p2512_p6), %s614_s0, 512, %s616_s13, [#allocation15], %s2357_s21, %s2357_s21, %s2358_s19  }
  0x34   : > { %s46_s29 = ssub.s32 %s2348_s24, %s2542_s26  ;;  %s49_s20 = sadd.s32 1, %s2344_s23 }
  0x35   : > { %p47_p7 = scmp.eq.s32.totalorder %s46_s29, 0  ;;  %p56_p8 = scmp.ne.s32.totalorder %s2344_s23, %s2340_s22 }
  0x36   : > { %p57_p9 = scmp.eq.s32.totalorder %s2348_s24, 0  ;;  %p62_p10 = scmp.ne.s32.totalorder %s2340_s22, %s2336_s1 }
  0x37   : > { %s2553_s2 = scalar_select %p47_p7, %s2344_s23, %s49_s20  }
  0x38   : > { %p2555_p11 = por %p57_p9, %p56_p8  ;;  %p2561_p12 = por %p63_p1, %p62_p10 }
  0x39   : > { %2983 = sst [smem:[#allocation27_spill]] %s2553_s2  ;;  %p490_p13 = scmp.eq.s32.totalorder %s2495_s27, 1 }
  0x3a   : > { %p496_p0 = scmp.eq.s32.totalorder %s1771_s3, 1  ;;  %p1911_p2 = scmp.lt.s32.totalorder %s2348_s24, 2 }
  0x3b   : > { %s2568_s17 = sand.u32 1, %s2344_s23   ;;  %p2570_p5 = por %p490_p13, %p56_p8 }
  0x3c   : > { %p2574_p6 = por %p496_p0, %p62_p10  ;;  %s1780_s0 = sshll.u32 %s2568_s17, 3 }
  0x3d   : > { %s1781_s21 = sshll.u32 %s2348_s24, 3  ;;  %s2989_s13 = sld [smem:[#allocation29_spill]] }
  0x3e   : > { %s2987_s30 = scalar_select %p2574_p6, 1, 0 }
  0x3f   : > { %s636_s3 = scalar_lea.vmem [#allocation2], %s1780_s0  ;;  %p2585_p7 = pnand %p1911_p2, %p2555_p11 }
  0x40   : > { %2988 = sst [smem:[#allocation28_spill]] %s2987_s30  ;;  %s644_s20 = sshll.u32 %s636_s3, 4  ;;  %s645_s20 = int_to_ptr.vmem [resolvable:$true] %s644_s20 }
  0x41   : > { %s651_s16 = sand.u32 1, %s2348_s24   ;;  %s633_s18 = scalar_lea.sflag [#allocation3], %s2568_s17 }
  0x42   : > { %p2206_p9 = pneg %p2585_p7 }
  0x43   : > { %s640_s29 = scalar_lea.hbm %s2989_s13, %s1781_s21  ;;  %s2209_s21 = scalar_lea.hbm %s2989_s13, 16 }
  0x44   : > { %s642_s8 = sshll.u32 %s640_s29, 4  ;;  %s643_s8 = int_to_ptr.hbm [resolvable:$true] %s642_s8 }
  0x45   : > { %s2202_s2 = sshra.s32 %s643_s8, 4  ;;  %s2203_s2 = int_to_ptr.hbm [resolvable:$true] %s2202_s2 }
  0x46   : > { %s2204_s23 = scalar_lea.hbm %s2203_s2, 8  ;;  %p2210_p11 = scmp.lt.s32.totalorder %s2203_s2, %s2989_s13 }
  0x47   : > { %p2205_p8 = scmp.ne.s32.totalorder %s2203_s2, %s2204_s23  ;;  %p2211_p0 = scmp.lt.s32.totalorder %s2209_s21, %s2204_s23 }
  0x49   : > { %p2207_p10 = pnand %p2206_p9, %p2205_p8  ;;  %p2212_p2 = por %p2211_p0, %p2210_p11 }
  0x4b   : > { %p2208_p13 = pneg %p2207_p10 }
  0x4d   : > { %p2213_p4 = pnand %p2212_p2, %p2208_p13 }
  0x4f   : > { %2216 = shalt.err (!%p2213_p4)
}
  0x50   : > { %1897 = dma.hbm_to_vmem [thread:$0]  (!%p2585_p7), %s643_s8, 128, %s645_s20, %s633_s18  }
  0x51   : > { %s2991_s26 = sld [smem:[#allocation30_spill]]  ;;  %s654_s0 = scalar_lea.vmem [#allocation5], %s2568_s17 }
  0x52   : > { %s661_s15 = sshll.u32 %s654_s0, 4  ;;  %s652_s2 = scalar_lea.sflag [#allocation6], %s651_s16  ;;  %s662_s15 = int_to_ptr.vmem [resolvable:$true] %s661_s15 }
  0x57   : > { %s657_s30 = scalar_lea.hbm %s2991_s26, %s2348_s24  ;;  %s2239_s18 = scalar_lea.hbm %s2991_s26, 2 }
  0x58   : > { %s659_s1 = sshll.u32 %s657_s30, 4  ;;  %s660_s1 = int_to_ptr.hbm [resolvable:$true] %s659_s1 }
  0x59   : > { %s2232_s23 = sshra.s32 %s660_s1, 4  ;;  %s2233_s23 = int_to_ptr.hbm [resolvable:$true] %s2232_s23 }
  0x5a   : > { %s2234_s21 = scalar_lea.hbm %s2233_s23, 1  ;;  %p2240_p13 = scmp.lt.s32.totalorder %s2233_s23, %s2991_s26 }
  0x5b   : > { %p2235_p4 = scmp.ne.s32.totalorder %s2233_s23, %s2234_s21  ;;  %p2241_p11 = scmp.lt.s32.totalorder %s2239_s18, %s2234_s21 }
  0x5d   : > { %p2237_p8 = pnand %p2235_p4, %p2206_p9  ;;  %p2242_p0 = por %p2241_p11, %p2240_p13 }
  0x5f   : > { %p2238_p10 = pneg %p2237_p8 }
  0x61   : > { %p2243_p2 = pnand %p2242_p0, %p2238_p10 }
  0x63   : > { %2246 = shalt.err (!%p2243_p2)
}
  0x64   : > { %1900 = dma.hbm_to_vmem [thread:$0]  (!%p2585_p7), %s660_s1, 16, %s662_s15, %s652_s2  }
  0x65   : > { %670 = sbr.rel (%p2500_p3) target bundleno = 3538 (0xdd2), region = 100  ;;  %s2623_s16 = sand.u32 (!%p2500_p3), 1, %s2340_s22  }
  0x66   : > { %s1783_s17 = sshll.u32 (!%p2500_p3), %s2623_s16, 3  ;;  %s673_s30 = scalar_lea.sflag (!%p2500_p3), [#allocation3], %s2623_s16 }
  0x67   : > { %s676_s29 = scalar_lea.vmem (!%p2500_p3), [#allocation2], %s1783_s17 }
  0x6a   : > { %2307 = dma.done.wait (%p2561_p12), %s673_s30, 128  }
  0x6b   : > { %2309 = vsyncadd (%p2561_p12), %s673_s30, 4294967168  ;;  %s682_s14 = sand.u32 1, %s2495_s27   ;;  %s685_s28 = scalar_lea.vmem [#allocation5], %s2623_s16 }
  0x6c   : > { %s683_s1 = scalar_lea.sflag [#allocation6], %s682_s14 }
  0x6d   : > { %2311 = dma.done.wait (%p2561_p12), %s683_s1, 16  }
  0x6e   : > { %2313 = vsyncadd (%p2561_p12), %s683_s1, 4294967280 }
  0x6f   : > { %2315 = dma.done.wait (%p63_p1), [#allocation6], 16  }
  0x70   : > { %2317 = vsyncadd (%p63_p1), [#allocation6], 4294967280 }
  0x71   : > { %2319 = dma.done.wait (%p63_p1), [#allocation9], 48  }
  0x72   : > { %2321 = vsyncadd (%p63_p1), [#allocation9], 4294967248 }
  0x73   : > { %2323 = dma.done.wait (%p63_p1), [#allocation12], 544  }
  0x74   : > { %2325 = vsyncadd (%p63_p1), [#allocation12], 4294966752 }
  0x75   : > { %2327 = dma.done.wait (%p63_p1), [#allocation15], 512  }
  0x76   : > { %2329 = vsyncadd (%p63_p1), [#allocation15], 4294966784  ;;  %vm780_vm0 = vcmask 261120   ;;  %v777_v0 = vld [vmem:[%s676_s29] sm:$0xff]  ;;  %v2360_v4 = vmov 32.0   ;;  %s2992_s0 = sld [smem:[#allocation33_spill]] }
  0x77   : > { %v781_v1 = vsel %vm780_vm0, %v777_v0, 0.0  ;;  %v792_v2 = vmul.f32 %v777_v0, %v777_v0  ;;  %1988 = vrcp.f32 %v2360_v4  ;;  %v1967_v29 = vld [vmem:[#allocation7] ss:$0 sm:$0xff]  ;;  %v1968_v32 = vld [vmem:[#allocation8] ss:$0 sm:$0xff]  ;;  %s2361_s11 = smov 112  }
  0x78   : > { %782 = vadd.xlane.f32.xlu0 %v781_v1  ;;  %v1969_v35 = vld [vmem:[%s2929_s5] ss:$0 sm:$0xff]  ;;  %s2362_s30 = smov 64   ;;  %s2363_s29 = smov 96   ;;  %vm863_vm5 = vcmask 130048   ;;  %vm890_vm6 = vcmask 64512  }
  0x79   : > { %v793_v3 = vsel %vm780_vm0, %v792_v2, 0.0  ;;  %s2364_s14 = smov 48   ;;  %s2365_s1 = smov 80   ;;  %v2690_v43 = vld [vmem:[%s685_s28] ss:$0 sm:$0xff]  ;;  %v853_v49 = vld [vmem:[%s2930_s6 + $0x8] sm:$0xff] }
  0x7a   : > { %939 = vmatpush.msra.mxu3 %v853_v49  ;;  %v852_v53 = vld [vmem:[%s2930_s6] sm:$0xff]  ;;  %v855_v60 = vld [vmem:[%s2930_s6 + $0x18] sm:$0xff]  ;;  %s2993_s23 = sld [smem:[#allocation35_spill]]  ;;  %vm1121_vm10 = vcmask 523264   ;;  %s1842_s2 = sshll.u32 %s2495_s27, 3 }
  0x7b   : > { %s2995_s18 = sld [smem:[#allocation36_spill]] }
  0x7c   : > { %v824_v10 = vld [vmem:[%s2992_s0 + $0x18] sm:$0xff]  ;;  %v823_v11 = vld [vmem:[%s2992_s0 + $0x10] sm:$0xff]  ;;  %v822_v13 = vld [vmem:[%s2992_s0 + $0x8] sm:$0xff]  ;;  %940 = vmatpush.msra.mxu3 %v852_v53  ;;  %s2996_s25 = sld [smem:[#allocation38_spill]] }
  0x7d   : > { %v1989_v5 = vpop.eup %1988  ;;  %844 = vmatpush.msra.mxu0 %v824_v10  ;;  %v821_v15 = vld [vmem:[%s2992_s0] sm:$0xff]  ;;  %s2997_s15 = sld [smem:[#allocation40_spill]] }
  0x7e   : > { %v785_v6 = vmul.f32 32.0, %v1989_v5  ;;  %vm789_vm1 = vweird.f32 %v1989_v5  ;;  %1027 = vmatpush.msrb.mxu3 %v855_v60  ;;  %s2998_s8 = sld [smem:[#allocation43_spill]] }
  0x7f   : > { %845 = vmatpush.msra.mxu0 %v823_v11  ;;  %v1072_v11 = vld [vmem:[%s2934_s10 + $0x18] sm:$0xff] }
  0x80   : > { %794 = vadd.xlane.f32.xlu0 %v793_v3  ;;  %v786_v7 = vsub.f32 1.0, %v785_v6  ;;  %v1971_v3 = vld [vmem:[%s2931_s7] ss:$0 sm:$0xff]  ;;  %s2994_s21 = smov %s2993_s23 }
  0x81   : > { %846 = vmatpush.msra.mxu0 %v822_v13  ;;  %v1070_v13 = vld [vmem:[%s2934_s10 + $0x8] sm:$0xff] }
  0x82   : > { %v787_v8 = vmul.f32 %v1989_v5, %v786_v7 }
  0x83   : > { %847 = vmatpush.msra.mxu0 %v821_v15  ;;  %v1069_v15 = vld [vmem:[%s2934_s10] sm:$0xff] }
  0x84   : > { %v788_v9 = vadd.f32 %v1989_v5, %v787_v8  ;;  %s1620_s20 = scalar_lea.hbm %s2998_s8, %s1842_s2  ;;  %s2282_s19 = scalar_lea.hbm %s2998_s8, 16 }
  0x85   : > { %1092 = vmatpush.msrb.mxu0 %v1072_v11 }
  0x86   : > { %v2666_v14 = vsel %vm789_vm1, %v1989_v5, %v788_v9 }
  0xeb   : > { %v783_v12 = vpop.xlane.xlu0 %782 }
  0xec   : > { %v791_v16 = vmul.f32 %v2666_v14, %v783_v12  ;;  %v1071_v12 = vld [vmem:[%s2934_s10 + $0x10] sm:$0xff] }
  0xed   : > { %1093 = vmatpush.msrb.mxu0 %v1071_v12 }
  0xee   : > { %v797_v18 = vmul.f32 %v791_v16, %v791_v16  ;;  %v799_v28 = vsub.f32 %v777_v0, %v791_v16  ;;  %v854_v0 = vld [vmem:[%s2930_s6 + $0x10] sm:$0xff] }
  0xef   : > { %1028 = vmatpush.msrb.mxu3 %v854_v0  ;;  %1094 = vmatpush.msrb.mxu0 %v1070_v13  ;;  %v1805_v0 = vld [vmem:[%s2992_s0 + $0x38] sm:$0xff] }
  0xf1   : > { %1095 = vmatpush.msrb.mxu0 %v1069_v15 }
  0xf3   : > { %v795_v17 = vpop.xlane.xlu0 %794 }
  0xf4   : > { %v796_v19 = vmul.f32 %v795_v17, %v2666_v14 }
  0xf6   : > { %v798_v20 = vsub.f32 %v796_v19, %v797_v18 }
  0xf8   : > { %v800_v21 = vadd.f32 1e-12, %v798_v20 }
  0xfa   : > { %1990 = vrsqrt.f32 %v800_v21  ;;  %vm807_vm3 = vweird.f32 %v800_v21 }
 0x100   : > { %v1991_v22 = vpop.eup %1990 }
 0x101   : > { %v802_v23 = vmul.f32 %v1991_v22, %v800_v21  ;;  %vm808_vm2 = vweird.f32 %v1991_v22 }
 0x102   : > { %vm809_vm4 = vmor %vm807_vm3, %vm808_vm2 }
 0x103   : > { %v803_v24 = vmul.f32 %v1991_v22, %v802_v23 }
 0x105   : > { %v804_v25 = vmul.f32 0.5, %v803_v24 }
 0x107   : > { %v805_v26 = vsub.f32 1.5, %v804_v25 }
 0x109   : > { %v806_v27 = vmul.f32 %v1991_v22, %v805_v26 }
 0x10b   : > { %v810_v30 = vsel %vm809_vm4, %v1991_v22, %v806_v27 }
 0x10c   : > { %v811_v31 = vmul.f32 %v810_v30, %v799_v28  ;;  %v1972_v30 = vld [vmem:[#allocation10] ss:$0 sm:$0xff] }
 0x10e   : > { %v815_v33 = vmul.f32 %v1967_v29, %v811_v31 }
 0x110   : > { %v2673_v34 = vadd.f32 %v1968_v32, %v815_v33  ;;  %v1973_v33 = vld [vmem:[%s2933_s9] ss:$0 sm:$0xff] }
 0x112   : > { %1791 = vmatmul.msk.f32.vlgmr.msra.gmra.mxu0 %vm780_vm0, %v2673_v34 }
 0x18f   : > { %v849_v36 = vpop.f32.mrf.mxu0 }
 0x190   : > { %v850_v37 = vadd.f32 %v1969_v35, %v849_v36  ;;  %v1116_v36 = vld [vmem:[%s2936_s12 + $0x38] sm:$0xff] }
 0x192   : > { %949 = vrot.lane.b32.xlu0 %v850_v37, %s2361_s11  ;;  %896 = vrot.lane.b32.xlu2 %v850_v37, %s2362_s30 }
 0x193   : > { %861 = vrot.lane.b32.xlu1 %v850_v37, %s2363_s29 }
 0x19a   : > { %984 = vrot.lane.b32.xlu0 %v850_v37, %s2364_s14  ;;  %951 = vrot.lane.b32.xlu2 %v850_v37, %s2365_s1 }
 0x1ec   : > { %v897_v38 = vpop.permute.xlu2 %896 }
 0x1ed   : > { %917 = vmatpush.msra.mxu2 %v897_v38  ;;  %v1114_v38 = vld [vmem:[%s2936_s12 + $0x28] sm:$0xff] }
 0x1f4   : > { %v952_v39 = vpop.permute.xlu2 %951 }
 0x1f5   : > { %1796 = vmatpush.xpose.msk.msrb.mxu2 %vm863_vm5, %v952_v39  ;;  %v1113_v39 = vld [vmem:[%s2936_s12 + $0x20] sm:$0xff] }
 0x204   : > { %v950_v40 = vpop.permute.xlu0 %949 }
 0x205   : > { %v862_v41 = vpop.permute.xlu1 %861 }
 0x206   : > { %1792 = vmatpush.xpose.msk.msra.mxu1 %vm863_vm5, %v862_v41  ;;  %v1111_v41 = vld [vmem:[%s2936_s12 + $0x10] sm:$0xff] }
 0x209   : > { %1793 = vmatmul.msk.f32.vlgmr.msra.gmra.mxu1 %vm863_vm5, %v850_v37  ;;  %v1115_v37 = vld [vmem:[%s2936_s12 + $0x30] sm:$0xff] }
 0x20c   : > { %v985_v42 = vpop.permute.xlu0 %984 }
 0x20d   : > { %1005 = vmatpush.msrb.mxu1 %v985_v42  ;;  %v1110_v42 = vld [vmem:[%s2936_s12 + $0x8] sm:$0xff] }
 0x20f   : > { %1205 = vmatpush.msra.mxu1 %v1805_v0  ;;  %v1825_v0 = vld [vmem:[%s2934_s10 + $0x38] sm:$0xff] }
 0x286   : > { %v885_v44 = vpop.f32.mrf.mxu1 }
 0x287   : > { %v886_v45 = vadd.f32 %v2690_v43, %v885_v44  ;;  %v1109_v44 = vld [vmem:[%s2936_s12] sm:$0xff] }
 0x289   : > { %v888_v46 = vmul.f32 1.442695, %v886_v45  ;;  %v1974_v45 = vld [vmem:[%s2993_s23] ss:$0 sm:$0xff] }
 0x28b   : > { %1992 = vpow2.f32 %v888_v46 }
 0x291   : > { %v1993_v47 = vpop.eup %1992 }
 0x292   : > { %v891_v48 = vsel %vm890_vm6, %v1993_v47, 0.0 }
 0x293   : > { %892 = vadd.xlane.f32.xlu1 %v891_v48 }
 0x306   : > { %v893_v50 = vpop.xlane.xlu1 %892 }
 0x307   : > { %1994 = vrcp.f32 %v893_v50 }
 0x30d   : > { %v1995_v51 = vpop.eup %1994 }
 0x30e   : > { %v895_v52 = vmul.f32 %v1995_v51, %v1993_v47 }
 0x310   : > { %1794 = vmatmul.msk.f32.vlgmr.msra.gmra.mxu2 %vm890_vm6, %v895_v52 }
 0x311   : > { %1133 = vmatpush.msra.mxu2 %v1116_v36 }
 0x313   : > { %1134 = vmatpush.msra.mxu2 %v1115_v37 }
 0x315   : > { %1135 = vmatpush.msra.mxu2 %v1114_v38 }
 0x317   : > { %1136 = vmatpush.msra.mxu2 %v1113_v39 }
 0x318   : > { %1797 = vmatmul.msk.f32.vlgmr.msrb.gmra.mxu2 %vm863_vm5, %v950_v40  ;;  %v1112_v40 = vld [vmem:[%s2936_s12 + $0x18] sm:$0xff] }
 0x319   : > { %1137 = vmatpush.msra.mxu2 %v1112_v40 }
 0x31b   : > { %1138 = vmatpush.msra.mxu2 %v1111_v41 }
 0x31d   : > { %1139 = vmatpush.msra.mxu2 %v1110_v42 }
 0x31f   : > { %1140 = vmatpush.msra.mxu2 %v1109_v44 }
 0x393   : > { %v919_v54 = vpop.f32.mrf.mxu2 }
 0x394   : > { %1795 = vmatmul.msk.f32.vlgmr.msra.gmra.mxu3 %vm863_vm5, %v919_v54 }
 0x39b   : > { %v974_v55 = vpop.f32.mrf.mxu2 }
 0x39c   : > { %v975_v56 = vadd.f32 %v2690_v43, %v974_v55 }
 0x39e   : > { %v977_v57 = vmul.f32 1.442695, %v975_v56 }
 0x3a0   : > { %1996 = vpow2.f32 %v977_v57  ;;  %v1975_v57 = vld [vmem:[%s2995_s18] ss:$0 sm:$0xff] }
 0x3a6   : > { %v1997_v58 = vpop.eup %1996 }
 0x3a7   : > { %v979_v59 = vsel %vm890_vm6, %v1997_v58, 0.0 }
 0x3a8   : > { %980 = vadd.xlane.f32.xlu2 %v979_v59 }
 0x417   : > { %v942_v2 = vpop.f32.mrf.mxu3 }
 0x418   : > { %v948_v4 = vadd.f32 %v1971_v3, %v942_v2  ;;  %v1803_v2 = vld [vmem:[%s2992_s0 + $0x28] sm:$0xff]  ;;  %v1802_v3 = vld [vmem:[%s2992_s0 + $0x20] sm:$0xff] }
 0x41b   : > { %v981_v61 = vpop.xlane.xlu2 %980 }
 0x41c   : > { %1998 = vrcp.f32 %v981_v61 }
 0x422   : > { %v1999_v62 = vpop.eup %1998 }
 0x423   : > { %v983_v63 = vmul.f32 %v1999_v62, %v1997_v58 }
 0x425   : > { %1798 = vmatmul.msk.f32.vlgmr.msrb.gmra.mxu1 %vm890_vm6, %v983_v63 }
 0x4a2   : > { %v1007_v1 = vpop.f32.mrf.mxu1 }
 0x4a3   : > { %1799 = vmatmul.msk.f32.vlgmr.msrb.gmra.mxu3 %vm863_vm5, %v1007_v1  ;;  %v1804_v1 = vld [vmem:[%s2992_s0 + $0x30] sm:$0xff] }
 0x4a4   : > { %1206 = vmatpush.msra.mxu1 %v1804_v1  ;;  %v1824_v1 = vld [vmem:[%s2934_s10 + $0x30] sm:$0xff] }
 0x4a6   : > { %1207 = vmatpush.msra.mxu1 %v1803_v2  ;;  %v1823_v2 = vld [vmem:[%s2934_s10 + $0x28] sm:$0xff] }
 0x4a8   : > { %1208 = vmatpush.msra.mxu1 %v1802_v3  ;;  %v1822_v3 = vld [vmem:[%s2934_s10 + $0x20] sm:$0xff] }
 0x526   : > { %v1030_v5 = vpop.f32.mrf.mxu3 }
 0x527   : > { %v1033_v6 = vadd.f32 %v1030_v5, %v948_v4 }
 0x529   : > { %v1034_v7 = vadd.f32 %v1033_v6, %v2673_v34 }
 0x52b   : > { %v1037_v8 = vsel %vm780_vm0, %v1034_v7, 0.0  ;;  %v1041_v9 = vmul.f32 %v1034_v7, %v1034_v7 }
 0x52c   : > { %1038 = vadd.xlane.f32.xlu0 %v1037_v8 }
 0x52d   : > { %v1042_v10 = vsel %vm780_vm0, %v1041_v9, 0.0 }
 0x52e   : > { %1043 = vadd.xlane.f32.xlu1 %v1042_v10 }
 0x59f   : > { %v1039_v16 = vpop.xlane.xlu0 %1038 }
 0x5a0   : > { %v1040_v17 = vmul.f32 %v1039_v16, %v2666_v14 }
 0x5a1   : > { %v1044_v18 = vpop.xlane.xlu1 %1043 }
 0x5a2   : > { %v1046_v19 = vmul.f32 %v1040_v17, %v1040_v17  ;;  %v1045_v20 = vmul.f32 %v1044_v18, %v2666_v14  ;;  %v1048_v29 = vsub.f32 %v1034_v7, %v1040_v17 }
 0x5a4   : > { %v1047_v21 = vsub.f32 %v1045_v20, %v1046_v19  ;;  %v1976_v19 = vld [vmem:[#allocation11] ss:$0 sm:$0xff] }
 0x5a6   : > { %v1049_v22 = vadd.f32 1e-12, %v1047_v21 }
 0x5a8   : > { %2000 = vrsqrt.f32 %v1049_v22  ;;  %vm1056_vm8 = vweird.f32 %v1049_v22 }
 0x5ae   : > { %v2001_v23 = vpop.eup %2000 }
 0x5af   : > { %v1051_v24 = vmul.f32 %v2001_v23, %v1049_v22  ;;  %vm1057_vm7 = vweird.f32 %v2001_v23  ;;  %v1977_v22 = vld [vmem:[%s2996_s25] ss:$0 sm:$0xff] }
 0x5b0   : > { %vm1058_vm9 = vmor %vm1056_vm8, %vm1057_vm7 }
 0x5b1   : > { %v1052_v25 = vmul.f32 %v2001_v23, %v1051_v24 }
 0x5b3   : > { %v1053_v26 = vmul.f32 0.5, %v1052_v25  ;;  %v1978_v25 = vld [vmem:[%s2929_s5 + $0x1] ss:$0 sm:$0xff] }
 0x5b5   : > { %v1054_v27 = vsub.f32 1.5, %v1053_v26 }
 0x5b7   : > { %v1055_v28 = vmul.f32 %v2001_v23, %v1054_v27 }
 0x5b9   : > { %v1059_v31 = vsel %vm1058_vm9, %v2001_v23, %v1055_v28 }
 0x5ba   : > { %v1060_v32 = vmul.f32 %v1059_v31, %v1048_v29 }
 0x5bc   : > { %v1064_v34 = vmul.f32 %v1972_v30, %v1060_v32 }
 0x5be   : > { %v1068_v35 = vadd.f32 %v1973_v33, %v1064_v34 }
 0x5c0   : > { %1800 = vmatmul.msk.f32.vlgmr.msrb.gmra.mxu0 %vm780_vm0, %v1068_v35 }
 0x63d   : > { %v1097_v46 = vpop.f32.mrf.mxu0 }
 0x63e   : > { %v1098_v47 = vadd.f32 %v1974_v45, %v1097_v46  ;;  %v1809_v45 = vld [vmem:[%s2930_s6 + $0x28] sm:$0xff] }
 0x63f   : > { %1297 = vmatpush.msrb.mxu1 %v1809_v45 }
 0x640   : > { %v1101_v48 = vmul.f32 0.044715, %v1098_v47  ;;  %v1100_v54 = vmul.f32 0.5, %v1098_v47 }
 0x642   : > { %v1102_v49 = vmul.f32 %v1101_v48, %v1098_v47 }
 0x644   : > { %v1103_v50 = vmul.f32 %v1102_v49, %v1098_v47 }
 0x646   : > { %v1104_v51 = vadd.f32 %v1103_v50, %v1098_v47  ;;  %v1808_v50 = vld [vmem:[%s2930_s6 + $0x20] sm:$0xff] }
 0x647   : > { %1298 = vmatpush.msrb.mxu1 %v1808_v50 }
 0x648   : > { %v1105_v52 = vmul.f32 0.7978846, %v1104_v51  ;;  %v1811_v51 = vld [vmem:[%s2930_s6 + $0x38] sm:$0xff] }
 0x649   : > { %1385 = vmatpush.msrb.mxu2 %v1811_v51 }
 0x64a   : > { %2002 = vtanh.f32 %v1105_v52  ;;  %v1810_v52 = vld [vmem:[%s2930_s6 + $0x30] sm:$0xff] }
 0x64b   : > { %1386 = vmatpush.msrb.mxu2 %v1810_v52  ;;  %v1548_v52 = vld [vmem:[#allocation13 + $0x18] sm:$0xff] }
 0x650   : > { %v2003_v53 = vpop.eup %2002 }
 0x651   : > { %v1107_v55 = vadd.f32 1.0, %v2003_v53 }
 0x653   : > { %v1108_v56 = vmul.f32 %v1107_v55, %v1100_v54  ;;  %v1979_v55 = vld [vmem:[%s2931_s7 + $0x1] ss:$0 sm:$0xff] }
 0x655   : > { %1801 = vmatmul.msk.f32.vlgmr.msra.gmra.mxu2 %vm1121_vm10, %v1108_v56 }
 0x6d8   : > { %v1142_v58 = vpop.f32.mrf.mxu2 }
 0x6d9   : > { %v1143_v59 = vadd.f32 %v1975_v57, %v1142_v58 }
 0x6db   : > { %v1145_v60 = vadd.f32 %v1143_v59, %v1068_v35 }
 0x6dd   : > { %v1148_v61 = vsel %vm780_vm0, %v1145_v60, 0.0  ;;  %v1152_v62 = vmul.f32 %v1145_v60, %v1145_v60 }
 0x6de   : > { %1149 = vadd.xlane.f32.xlu2 %v1148_v61 }
 0x6df   : > { %v1153_v63 = vsel %vm780_vm0, %v1152_v62, 0.0 }
 0x6e0   : > { %1154 = vadd.xlane.f32.xlu1 %v1153_v63 }
 0x751   : > { %v1150_v4 = vpop.xlane.xlu2 %1149 }
 0x752   : > { %v1151_v5 = vmul.f32 %v1150_v4, %v2666_v14 }
 0x753   : > { %v1155_v6 = vpop.xlane.xlu1 %1154 }
 0x754   : > { %v1157_v7 = vmul.f32 %v1151_v5, %v1151_v5  ;;  %v1156_v8 = vmul.f32 %v1155_v6, %v2666_v14  ;;  %v1159_v18 = vsub.f32 %v1145_v60, %v1151_v5 }
 0x756   : > { %v1158_v9 = vsub.f32 %v1156_v8, %v1157_v7 }
 0x758   : > { %v1160_v10 = vadd.f32 1e-12, %v1158_v9 }
 0x75a   : > { %2004 = vrsqrt.f32 %v1160_v10  ;;  %vm1167_vm12 = vweird.f32 %v1160_v10 }
 0x760   : > { %v2005_v11 = vpop.eup %2004 }
 0x761   : > { %v1162_v12 = vmul.f32 %v2005_v11, %v1160_v10  ;;  %vm1168_vm11 = vweird.f32 %v2005_v11 }
 0x762   : > { %vm1169_vm13 = vmor %vm1167_vm12, %vm1168_vm11 }
 0x763   : > { %v1163_v13 = vmul.f32 %v2005_v11, %v1162_v12 }
 0x765   : > { %v1164_v15 = vmul.f32 0.5, %v1163_v13 }
 0x767   : > { %v1165_v16 = vsub.f32 1.5, %v1164_v15 }
 0x769   : > { %v1166_v17 = vmul.f32 %v2005_v11, %v1165_v16 }
 0x76b   : > { %v1170_v20 = vsel %vm1169_vm13, %v2005_v11, %v1166_v17 }
 0x76c   : > { %v1171_v21 = vmul.f32 %v1170_v20, %v1159_v18 }
 0x76e   : > { %v1175_v23 = vmul.f32 %v1976_v19, %v1171_v21  ;;  %v1980_v19 = vld [vmem:[#allocation10 + $0x1] ss:$0 sm:$0xff] }
 0x770   : > { %v1179_v24 = vadd.f32 %v1977_v22, %v1175_v23  ;;  %v1981_v22 = vld [vmem:[%s2933_s9 + $0x1] ss:$0 sm:$0xff] }
 0x772   : > { %1807 = vmatmul.msk.f32.vlgmr.msra.gmra.mxu1 %vm780_vm0, %v1179_v24 }
 0x773   : > { %1454 = vmatpush.msra.mxu1 %v1825_v0 }
 0x775   : > { %1455 = vmatpush.msra.mxu1 %v1824_v1 }
 0x777   : > { %1456 = vmatpush.msra.mxu1 %v1823_v2 }
 0x779   : > { %1457 = vmatpush.msra.mxu1 %v1822_v3 }
 0x7ef   : > { %v1210_v26 = vpop.f32.mrf.mxu1 }
 0x7f0   : > { %v1211_v27 = vadd.f32 %v1978_v25, %v1210_v26  ;;  %v1835_v25 = vld [vmem:[%s2936_s12 + $0x78] sm:$0xff]  ;;  %v1834_v26 = vld [vmem:[%s2936_s12 + $0x70] sm:$0xff] }
 0x7f2   : > { %1307 = vrot.lane.b32.xlu0 %v1211_v27, %s2361_s11  ;;  %1309 = vrot.lane.b32.xlu1 %v1211_v27, %s2365_s1  ;;  %s2999_s11 = sld [smem:[#allocation42_spill]]  ;;  %s1610_s1 = scalar_lea.sflag [#allocation4], %s2623_s16 }
 0x7f3   : > { %1221 = vrot.lane.b32.xlu2 %v1211_v27, %s2363_s29 }
 0x7fa   : > { %1254 = vrot.lane.b32.xlu0 %v1211_v27, %s2362_s30  ;;  %s776_s30 = scalar_lea.vmem [#allocation16], %s1783_s17 }
 0x7fb   : > { %s1622_s29 = sshll.u32 %s776_s30, 4  ;;  %s1623_s29 = int_to_ptr.vmem [resolvable:$true] %s1622_s29 }
 0x802   : > { %1342 = vrot.lane.b32.xlu0 %v1211_v27, %s2364_s14  ;;  %s1624_s14 = sshll.u32 %s1620_s20, 4  ;;  %s1625_s14 = int_to_ptr.hbm [resolvable:$true] %s1624_s14 }
 0x803   : > { %s2276_s27 = sshra.s32 %s1625_s14, 4  ;;  %s2277_s27 = int_to_ptr.hbm [resolvable:$true] %s2276_s27 }
 0x804   : > { %p2283_p7 = scmp.lt.s32.totalorder %s2277_s27, %s2998_s8 }
 0x84d   : > { %v1222_v28 = vpop.permute.xlu2 %1221 }
 0x84e   : > { %1813 = vmatpush.xpose.msk.msra.mxu3 %vm863_vm5, %v1222_v28  ;;  %v1832_v28 = vld [vmem:[%s2936_s12 + $0x60] sm:$0xff] }
 0x851   : > { %1814 = vmatmul.msk.f32.vlgmr.msra.gmra.mxu3 %vm863_vm5, %v1211_v27  ;;  %v1833_v27 = vld [vmem:[%s2936_s12 + $0x68] sm:$0xff] }
 0x864   : > { %v1308_v29 = vpop.permute.xlu0 %1307  ;;  %v1310_v30 = vpop.permute.xlu1 %1309 }
 0x865   : > { %1817 = vmatpush.xpose.msk.msrb.mxu3 %vm863_vm5, %v1310_v30  ;;  %v1830_v30 = vld [vmem:[%s2936_s12 + $0x50] sm:$0xff] }
 0x868   : > { %1818 = vmatmul.msk.f32.vlgmr.msrb.gmra.mxu3 %vm863_vm5, %v1308_v29  ;;  %v1831_v29 = vld [vmem:[%s2936_s12 + $0x58] sm:$0xff] }
 0x869   : > { %1496 = vmatpush.msra.mxu3 %v1835_v25 }
 0x86b   : > { %1497 = vmatpush.msra.mxu3 %v1834_v26 }
 0x86c   : > { %v1255_v31 = vpop.permute.xlu0 %1254 }
 0x86d   : > { %1275 = vmatpush.msra.mxu0 %v1255_v31  ;;  %1498 = vmatpush.msra.mxu3 %v1833_v27  ;;  %v1829_v31 = vld [vmem:[%s2936_s12 + $0x48] sm:$0xff] }
 0x86f   : > { %1499 = vmatpush.msra.mxu3 %v1832_v28 }
 0x871   : > { %1500 = vmatpush.msra.mxu3 %v1831_v29 }
 0x873   : > { %1501 = vmatpush.msra.mxu3 %v1830_v30 }
 0x874   : > { %v1343_v32 = vpop.permute.xlu0 %1342 }
 0x875   : > { %1363 = vmatpush.msrb.mxu0 %v1343_v32  ;;  %v1828_v32 = vld [vmem:[%s2936_s12 + $0x40] sm:$0xff]  ;;  %1502 = vmatpush.msra.mxu3 %v1829_v31 }
 0x877   : > { %1503 = vmatpush.msra.mxu3 %v1828_v32 }
 0x8d4   : > { %v1244_v33 = vpop.f32.mrf.mxu3 }
 0x8d5   : > { %v1245_v34 = vadd.f32 %v2690_v43, %v1244_v33  ;;  %v1982_v33 = vld [vmem:[%s2994_s21 + $0x1] ss:$0 sm:$0xff] }
 0x8d7   : > { %v1247_v35 = vmul.f32 1.442695, %v1245_v34 }
 0x8d9   : > { %2006 = vpow2.f32 %v1247_v35 }
 0x8df   : > { %v2007_v36 = vpop.eup %2006 }
 0x8e0   : > { %v1249_v37 = vsel %vm890_vm6, %v2007_v36, 0.0 }
 0x8e1   : > { %1250 = vadd.xlane.f32.xlu2 %v1249_v37 }
 0x8eb   : > { %v1332_v38 = vpop.f32.mrf.mxu3 }
 0x8ec   : > { %v1333_v39 = vadd.f32 %v2690_v43, %v1332_v38 }
 0x8ee   : > { %v1335_v40 = vmul.f32 1.442695, %v1333_v39 }
 0x8f0   : > { %2008 = vpow2.f32 %v1335_v40 }
 0x8f6   : > { %v2009_v41 = vpop.eup %2008 }
 0x8f7   : > { %v1337_v42 = vsel %vm890_vm6, %v2009_v41, 0.0 }
 0x8f8   : > { %1338 = vadd.xlane.f32.xlu1 %v1337_v42 }
 0x954   : > { %v1251_v44 = vpop.xlane.xlu2 %1250 }
 0x955   : > { %2010 = vrcp.f32 %v1251_v44 }
 0x95b   : > { %v2011_v46 = vpop.eup %2010 }
 0x95c   : > { %v1253_v47 = vmul.f32 %v2011_v46, %v2007_v36  ;;  %v1983_v46 = vld [vmem:[%s2995_s18 + $0x1] ss:$0 sm:$0xff] }
 0x95e   : > { %1815 = vmatmul.msk.f32.vlgmr.msra.gmra.mxu0 %vm890_vm6, %v1253_v47 }
 0x95f   : > { %1568 = vmatpush.msra.mxu0 %v1548_v52 }
 0x96b   : > { %v1339_v48 = vpop.xlane.xlu1 %1338 }
 0x96c   : > { %2012 = vrcp.f32 %v1339_v48 }
 0x972   : > { %v2013_v43 = vpop.eup %2012 }
 0x973   : > { %v1341_v49 = vmul.f32 %v2013_v43, %v2009_v41 }
 0x975   : > { %1819 = vmatmul.msk.f32.vlgmr.msrb.gmra.mxu0 %vm890_vm6, %v1341_v49 }
 0x9db   : > { %v1277_v53 = vpop.f32.mrf.mxu0 }
 0x9dc   : > { %1816 = vmatmul.msk.f32.vlgmr.msrb.gmra.mxu1 %vm863_vm5, %v1277_v53  ;;  %v1547_v53 = vld [vmem:[#allocation13 + $0x10] sm:$0xff] }
 0x9dd   : > { %1569 = vmatpush.msra.mxu0 %v1547_v53 }
 0x9f2   : > { %v1365_v54 = vpop.f32.mrf.mxu0 }
 0x9f3   : > { %1820 = vmatmul.msk.f32.vlgmr.msrb.gmra.mxu2 %vm863_vm5, %v1365_v54  ;;  %v1546_v54 = vld [vmem:[#allocation13 + $0x8] sm:$0xff] }
 0x9f4   : > { %1570 = vmatpush.msra.mxu0 %v1546_v54 }
 0xa59   : > { %v1300_v56 = vpop.f32.mrf.mxu1 }
 0xa5a   : > { %v1306_v57 = vadd.f32 %v1979_v55, %v1300_v56  ;;  %v1545_v55 = vld [vmem:[#allocation13] sm:$0xff] }
 0xa5b   : > { %1571 = vmatpush.msra.mxu0 %v1545_v55 }
 0xa76   : > { %v1388_v58 = vpop.f32.mrf.mxu2 }
 0xa77   : > { %v1391_v59 = vadd.f32 %v1388_v58, %v1306_v57 }
 0xa79   : > { %v1392_v60 = vadd.f32 %v1391_v59, %v1179_v24 }
 0xa7b   : > { %v1397_v61 = vsel %vm780_vm0, %v1392_v60, 0.0  ;;  %v1401_v62 = vmul.f32 %v1392_v60, %v1392_v60 }
 0xa7c   : > { %1398 = vadd.xlane.f32.xlu0 %v1397_v61 }
 0xa7d   : > { %v1402_v63 = vsel %vm780_vm0, %v1401_v62, 0.0 }
 0xa7e   : > { %1403 = vadd.xlane.f32.xlu2 %v1402_v63 }
 0xaef   : > { %v1399_v4 = vpop.xlane.xlu0 %1398 }
 0xaf0   : > { %v1400_v5 = vmul.f32 %v1399_v4, %v2666_v14 }
 0xaf1   : > { %v1404_v6 = vpop.xlane.xlu2 %1403 }
 0xaf2   : > { %v1406_v7 = vmul.f32 %v1400_v5, %v1400_v5  ;;  %v1405_v8 = vmul.f32 %v1404_v6, %v2666_v14  ;;  %v1408_v18 = vsub.f32 %v1392_v60, %v1400_v5  ;;  %v1984_v6 = vld [vmem:[#allocation11 + $0x1] ss:$0 sm:$0xff] }
 0xaf4   : > { %v1407_v9 = vsub.f32 %v1405_v8, %v1406_v7 }
 0xaf6   : > { %v1409_v10 = vadd.f32 1e-12, %v1407_v9 }
 0xaf8   : > { %2014 = vrsqrt.f32 %v1409_v10  ;;  %vm1416_vm15 = vweird.f32 %v1409_v10 }
 0xafe   : > { %v2015_v11 = vpop.eup %2014 }
 0xaff   : > { %v1411_v12 = vmul.f32 %v2015_v11, %v1409_v10  ;;  %vm1417_vm14 = vweird.f32 %v2015_v11 }
 0xb00   : > { %vm1418_vm1 = vmor %vm1416_vm15, %vm1417_vm14 }
 0xb01   : > { %v1412_v13 = vmul.f32 %v2015_v11, %v1411_v12  ;;  %v1579_v12 = vld [vmem:[#allocation14 + $0x10] sm:$0xff] }
 0xb03   : > { %v1413_v15 = vmul.f32 0.5, %v1412_v13  ;;  %v1578_v13 = vld [vmem:[#allocation14 + $0x8] sm:$0xff] }
 0xb05   : > { %v1414_v16 = vsub.f32 1.5, %v1413_v15  ;;  %v1577_v15 = vld [vmem:[#allocation14] sm:$0xff] }
 0xb07   : > { %v1415_v17 = vmul.f32 %v2015_v11, %v1414_v16  ;;  %v1986_v16 = vld [vmem:[%s2997_s15] ss:$0 sm:$0xff]  ;;  %s2278_s15 = scalar_lea.hbm %s2277_s27, 8 }
 0xb08   : > { %p2279_p1 = scmp.ne.s32.totalorder %s2277_s27, %s2278_s15  ;;  %p2284_p9 = scmp.lt.s32.totalorder %s2282_s19, %s2278_s15 }
 0xb09   : > { %v1419_v20 = vsel %vm1418_vm1, %v2015_v11, %v1415_v17  ;;  %v1580_v11 = vld [vmem:[#allocation14 + $0x18] sm:$0xff] }
 0xb0a   : > { %v1420_v21 = vmul.f32 %v1419_v20, %v1408_v18  ;;  %1600 = vmatpush.msra.mxu2 %v1580_v11  ;;  %v1987_v20 = vld [vmem:[%s2999_s11] ss:$0 sm:$0xff]  ;;  %p2280_p3 = pnand %p2279_p1, %p2570_p5  ;;  %p2285_p4 = por %p2284_p9, %p2283_p7 }
 0xb0c   : > { %v1424_v23 = vmul.f32 %v1980_v19, %v1420_v21  ;;  %1601 = vmatpush.msra.mxu2 %v1579_v12  ;;  %p2281_p12 = pneg %p2280_p3 }
 0xb0e   : > { %v1428_v24 = vadd.f32 %v1981_v22, %v1424_v23  ;;  %1602 = vmatpush.msra.mxu2 %v1578_v13  ;;  %p2286_p8 = pnand %p2285_p4, %p2281_p12 }
 0xb10   : > { %1827 = vmatmul.msk.f32.vlgmr.msra.gmra.mxu1 %vm780_vm0, %v1428_v24  ;;  %1603 = vmatpush.msra.mxu2 %v1577_v15 }
 0xb8d   : > { %v1459_v34 = vpop.f32.mrf.mxu1 }
 0xb8e   : > { %v1460_v35 = vadd.f32 %v1982_v33, %v1459_v34 }
 0xb90   : > { %v1463_v36 = vmul.f32 0.044715, %v1460_v35  ;;  %v1462_v42 = vmul.f32 0.5, %v1460_v35 }
 0xb92   : > { %v1464_v37 = vmul.f32 %v1463_v36, %v1460_v35 }
 0xb94   : > { %v1465_v38 = vmul.f32 %v1464_v37, %v1460_v35 }
 0xb96   : > { %v1466_v39 = vadd.f32 %v1465_v38, %v1460_v35 }
 0xb98   : > { %v1467_v40 = vmul.f32 0.7978846, %v1466_v39 }
 0xb9a   : > { %2016 = vtanh.f32 %v1467_v40 }
 0xba0   : > { %v2017_v41 = vpop.eup %2016 }
 0xba1   : > { %v1469_v44 = vadd.f32 1.0, %v2017_v41 }
 0xba3   : > { %v1470_v45 = vmul.f32 %v1469_v44, %v1462_v42 }
 0xba5   : > { %1837 = vmatmul.msk.f32.vlgmr.msra.gmra.mxu3 %vm1121_vm10, %v1470_v45 }
 0xc28   : > { %v1505_v47 = vpop.f32.mrf.mxu3 }
 0xc29   : > { %v1506_v48 = vadd.f32 %v1983_v46, %v1505_v47 }
 0xc2b   : > { %v1508_v43 = vadd.f32 %v1506_v48, %v1428_v24 }
 0xc2d   : > { %v1513_v49 = vsel %vm780_vm0, %v1508_v43, 0.0  ;;  %v1517_v50 = vmul.f32 %v1508_v43, %v1508_v43 }
 0xc2e   : > { %1514 = vadd.xlane.f32.xlu1 %v1513_v49 }
 0xc2f   : > { %v1518_v51 = vsel %vm780_vm0, %v1517_v50, 0.0 }
 0xc30   : > { %1519 = vadd.xlane.f32.xlu2 %v1518_v51 }
 0xca1   : > { %v1515_v56 = vpop.xlane.xlu1 %1514 }
 0xca2   : > { %v1516_v57 = vmul.f32 %v1515_v56, %v2666_v14 }
 0xca3   : > { %v1520_v58 = vpop.xlane.xlu2 %1519 }
 0xca4   : > { %v1522_v59 = vmul.f32 %v1516_v57, %v1516_v57  ;;  %v1521_v60 = vmul.f32 %v1520_v58, %v2666_v14  ;;  %v1524_v5 = vsub.f32 %v1508_v43, %v1516_v57  ;;  %v1985_v14 = vld [vmem:[%s2996_s25 + $0x1] ss:$0 sm:$0xff] }
 0xca6   : > { %v1523_v61 = vsub.f32 %v1521_v60, %v1522_v59 }
 0xca8   : > { %v1525_v62 = vadd.f32 1e-12, %v1523_v61 }
 0xcaa   : > { %2018 = vrsqrt.f32 %v1525_v62  ;;  %vm1532_vm3 = vweird.f32 %v1525_v62 }
 0xcb0   : > { %v2019_v63 = vpop.eup %2018 }
 0xcb1   : > { %v1527_v0 = vmul.f32 %v2019_v63, %v1525_v62  ;;  %vm1533_vm2 = vweird.f32 %v2019_v63 }
 0xcb2   : > { %vm1534_vm4 = vmor %vm1532_vm3, %vm1533_vm2 }
 0xcb3   : > { %v1528_v1 = vmul.f32 %v2019_v63, %v1527_v0 }
 0xcb5   : > { %v1529_v2 = vmul.f32 0.5, %v1528_v1 }
 0xcb7   : > { %v1530_v3 = vsub.f32 1.5, %v1529_v2 }
 0xcb9   : > { %v1531_v4 = vmul.f32 %v2019_v63, %v1530_v3 }
 0xcbb   : > { %v1535_v7 = vsel %vm1534_vm4, %v2019_v63, %v1531_v4 }
 0xcbc   : > { %v1536_v8 = vmul.f32 %v1535_v7, %v1524_v5 }
 0xcbe   : > { %v1540_v9 = vmul.f32 %v1984_v6, %v1536_v8 }
 0xcc0   : > { %v1544_v10 = vadd.f32 %v1985_v14, %v1540_v9 }
 0xcc2   : > { %1839 = vmatmul.msk.f32.vlgmr.msra.gmra.mxu0 %vm780_vm0, %v1544_v10 }
 0xd3f   : > { %v1573_v17 = vpop.f32.mrf.mxu0 }
 0xd40   : > { %v1574_v18 = vadd.f32 %v1986_v16, %v1573_v17 }
 0xd42   : > { %2020 = vtanh.f32 %v1574_v18 }
 0xd48   : > { %v2021_v19 = vpop.eup %2020 }
 0xd49   : > { %1840 = vmatmul.msk.f32.vlgmr.msra.gmra.mxu2 %vm780_vm0, %v2021_v19 }
 0xdcc   : > { %v1605_v21 = vpop.f32.mrf.mxu2 }
 0xdcd   : > { %v1606_v22 = vadd.f32 %v1987_v20, %v1605_v21 }
 0xdcf   : > { %1608 = vst [vmem:[%s776_s30] sm:$0xff] %v1606_v22 }
 0xdd0   : > { %2289 = shalt.err (!%p2286_p8)
}
 0xdd1   : > { %1873 = dma.vmem_to_hbm [thread:$0]  (%p2570_p5), %s1623_s29, 128, %s1625_s14, %s1610_s1  }
 0xdd2 PF: > { %s3000_s16 = sld [smem:[#allocation24_spill]]  ;;  %p3002_p10 = scmp.ge.s32.totalorder %s2348_s24, 2 }
 0xdd4   : > { %p1902_p13 = pnand %p3002_p10, %p2574_p6 }
 0xdd6   : > { %p1903_p11 = pneg %p1902_p13 }
 0xdd8   : > { %s1636_s28 = sand.u32 1, %s3000_s16  }
 0xdd9   : > { %s1637_s11 = scalar_lea.sflag [#allocation4], %s1636_s28 }
 0xdda   : > { %2331 = dma.done.wait (%p1903_p11), %s1637_s11, 128  }
 0xddb   : > { %2333 = vsyncadd (%p1903_p11), %s1637_s11, 4294967168  ;;  %s3003_s24 = sld [smem:[#allocation26_spill]]  ;;  %s3006_s1 = smov %s2340_s22 }
 0xddc   : > { %s3004_s30 = sld [smem:[#allocation25_spill]] }
 0xddd   : > { %s3005_s23 = sld [smem:[#allocation27_spill]] }
 0xde1   : > { %p39_p0 = scmp.ge.s32.totalorder %s3003_s24, 4  }
 0xde2   : > { %s3007_s22 = smov %s3004_s30 }
 0xde3   :  { %41 = sbr.rel (!%p39_p0) target bundleno = 26 (0x1a), region = 194 }
 0xde8   :  { %1643 = vsyncpa [#allocation3], 1 }
 0xde9   :  { %1645 = vsyncpa [#allocation3 + $0x1], 1 }
 0xdea   :  { %1646 = vsyncpa [#allocation6], 1 }
 0xdeb   :  { %1648 = vsyncpa [#allocation6 + $0x1], 1 }
 0xdec   :  { %1649 = vsyncpa [#allocation9], 1 }
 0xded   :  { %1650 = vsyncpa [#allocation12], 1 }
 0xdee   :  { %1651 = vsyncpa [#allocation15], 1 }
 0xdef   :  { %1652 = vsyncpa [#allocation4], 1 }
 0xdf0   :  { %1654 = vsyncpa [#allocation4 + $0x1], 1 }

</bundles_post_ra>
